<compile_context>
chip_gen: v5e
topology: v5e:2x2
jax: 0.10.0
libtpu: 0.0.40
codegen_flags: <defaults>
</compile_context>

<pallas_src>
import numpy as np
import jax
import jax.numpy as jnp
from jax.experimental import pallas as pl
from jax.experimental.pallas import tpu as pltpu

# ---------------- configuration (small shapes consistent with the module) ----------------
B      = 2                                        # batch
IN_CH  = 1                                        # in_channels (single EEG "image" channel)
NUM_T  = 8                                        # num_T
NUM_S  = 8                                        # out_channels == num_S
SR     = 32                                       # sampling_rate
H      = 8                                        # num_channels (EEG electrodes) == conv height
W      = 64                                       # time samples
KS     = [int(0.5 * SR) + 1, int(0.25 * SR) + 1, int(0.125 * SR) + 1]   # 17, 9, 5
H2     = int(H * 0.5)                             # Sception2 kernel height / stride = 4
TW3    = 3 * W                                    # concatenated Tception time axis = 192
OCB    = 256                                      # per-channel column block, padded to 2 lane tiles
BW     = B * W                                    # batch folded onto lanes = 128
HCAT   = 3 + H                                    # height after cat((Sception, out1), dim=2) = 11
H_OUT  = HCAT - 4 + 1                             # adjust_height output height = 8
EPS    = 1e-5
F32    = jnp.float32
BF16   = jnp.bfloat16


# ------------------------------------ fused kernel ---------------------------------------
def _fused_kernel(x_ref, band_ref, bnt_b_ref, p3l_ref, p3r_ref,
                  ws_ref, bns_s_ref, bns_b_ref,
                  wf3_ref, wfsel_ref, bnf_s3_ref, bnf_b3_ref,
                  bnf_s8_ref, bnf_b8_ref, wa2_ref, ba_ref,
                  o_ref, a_all_ref):
    def lrelu(v):                                                     # LeakyReLU(0.01)
        return jnp.where(v >= 0.0, v, 0.01 * v)

    # ---- Tception1/2/3 + cat(time) + BN_t + ReLU: one fused bf16 dot, one f32 VPU pass ----
    # BN_t scale is folded into band host-side; only the bias + clamps remain here.
    y = jnp.dot(x_ref[...], band_ref[...], preferred_element_type=F32)      # (16, NUM_T*OCB)
    y_act = jnp.maximum(lrelu(y) + bnt_b_ref[...], 0.0)

    # ---- fuse_T AvgPool2d((1,3),(1,3)) + layout change rows (b,h) -> (oc,h), lanes (b,w) ----
    # Pool matrices hold 1.0 entries (the /3 is folded downstream); padded columns are zeroed
    # by the zero pool rows.  Every slice below is (8,128)-tile aligned; results go straight
    # into the a_all scratch (no concatenate).
    p3l = p3l_ref[...]                                                       # (OCB, BW)
    p3r = p3r_ref[...]
    for oc in range(NUM_T):                                                  # static unroll
        c0 = oc * OCB
        blk = (jnp.dot(y_act[0:H, c0:c0 + OCB], p3l, preferred_element_type=F32) +
               jnp.dot(y_act[H:2 * H, c0:c0 + OCB], p3r, preferred_element_type=F32))
        a_all_ref[oc * H:(oc + 1) * H, :] = blk                              # (8, 128) write

    a_all = a_all_ref[...]                                                   # (NUM_T*H, BW)

    # ---- Sception1 + Sception2 (both output rows) in one stacked dot; BN_s + ReLU once ----
    s = jnp.dot(ws_ref[...], a_all, preferred_element_type=F32)              # (24, 128)
    s_act = jnp.maximum(lrelu(s) * bns_s_ref[...] + bns_b_ref[...], 0.0)

    # ---- fusion 1x1 conv (LeakyReLU) + BN_fusion + ReLU ----
    # Top 3 height rows: one block-diagonal (24,24) dot.  Bottom 8 pooled rows: one (64,64) dot.
    f_top = jnp.dot(wf3_ref[...], s_act, preferred_element_type=F32)         # (24, 128)
    f_top = jnp.maximum(lrelu(f_top) * bnf_s3_ref[...] + bnf_b3_ref[...], 0.0)
    f_bot = jnp.dot(wfsel_ref[...], a_all, preferred_element_type=F32)       # (64, 128)
    f_bot = jnp.maximum(lrelu(f_bot) * bnf_s8_ref[...] + bnf_b8_ref[...], 0.0)

    # ---- adjust_height: Conv2d(NUM_S, NUM_S, (4,1)) + bias as ONE (8,32)x(32,1024) dot ----
    blocks = ([f_top[r * NUM_S:(r + 1) * NUM_S] for r in range(3)] +
              [f_bot[h * NUM_S:(h + 1) * NUM_S] for h in range(H)])          # 11 x (8, 128)
    rhs = jnp.concatenate(
        [jnp.concatenate(blocks[dh:dh + H_OUT], axis=1) for dh in range(4)], axis=0)  # (32,1024)
    o_ref[...] = ba_ref[...] + jnp.dot(wa2_ref[...], rhs, preferred_element_type=F32)


# ------------------------------- pallas_call wrapper -------------------------------------
_VMEM = pl.BlockSpec(memory_space=pltpu.MemorySpace.VMEM)


def _fused_call(x_bf, d):
    return pl.pallas_call(
        _fused_kernel,
        out_shape=jax.ShapeDtypeStruct((NUM_S, H_OUT * BW), F32),
        in_specs=[_VMEM] * 16,
        out_specs=_VMEM,
        scratch_shapes=[pltpu.VMEM((NUM_T * H, BW), jnp.float32)],
    )(x_bf, d['band'], d['bnt_b'], d['p3l'], d['p3r'],
      d['ws'], d['bns_s'], d['bns_b'],
      d['wf3'], d['wfsel'], d['bnf_s3'], d['bnf_b3'], d['bnf_s8'], d['bnf_b8'],
      d['wa2'], d['ba'])


@jax.jit
def doubleconv_tsception_forward(x, d):
    """x: (B, IN_CH, H, W) NCHW with IN_CH == 1, like the PyTorch module."""
    x2d = x[:, 0].reshape(B * H, W).astype(BF16)                      # rows (b, h), lanes = time
    out = _fused_call(x2d, d)                                         # (NUM_S, H_OUT*B*W)
    out = out.reshape(NUM_S, H_OUT, B, W)
    return jnp.transpose(out, (2, 0, 1, 3))                           # (B, NUM_S, H_OUT, W)


# ------------------------------- parameter setup (glue) ----------------------------------
def init_params(key):
    keys = jax.random.split(key, 24)
    it = iter(keys)

    def nrm(shape, scale=0.1):
        return jax.random.normal(next(it), shape, F32) * scale

    def unif(shape, lo, hi):
        return jax.random.uniform(next(it), shape, F32, lo, hi)

    p = {}
    p['wt']   = [nrm((NUM_T, k), 0.2) for k in KS]                    # Tception convs (bias=False)
    p['bn_t'] = dict(g=unif((NUM_T,), 0.8, 1.2), b=nrm((NUM_T,), 0.05),
                     m=nrm((NUM_T,), 0.05), v=unif((NUM_T,), 0.5, 1.5))
    p['ws1']  = nrm((NUM_T, NUM_T, H), 0.1)                           # Sception1 (bias=False)
    p['ws2']  = nrm((NUM_T, NUM_T, H2), 0.1)                          # Sception2 (bias=False)
    p['bn_s'] = dict(g=unif((NUM_T,), 0.8, 1.2), b=nrm((NUM_T,), 0.05),
                     m=nrm((NUM_T,), 0.05), v=unif((NUM_T,), 0.5, 1.5))
    p['wf']   = nrm((NUM_S, NUM_T), 0.2)                              # fusion 1x1 conv (bias=False)
    p['bn_f'] = dict(g=unif((NUM_S,), 0.8, 1.2), b=nrm((NUM_S,), 0.05),
                     m=nrm((NUM_S,), 0.05), v=unif((NUM_S,), 0.5, 1.5))
    p['wa']   = nrm((NUM_S, NUM_S, 4), 0.1)                           # adjust_height conv weight
    p['ba']   = nrm((NUM_S,), 0.05)                                   # adjust_height conv bias
    return p


def build_derived(p):
    """Fold the PyTorch parameters into the matmul-friendly constants the kernel consumes."""
    d = {}

    def bn_fold(bn):                                                  # eval-mode BN -> affine
        g = np.asarray(bn['g'], np.float32); b = np.asarray(bn['b'], np.float32)
        m = np.asarray(bn['m'], np.float32); v = np.asarray(bn['v'], np.float32)
        s = g / np.sqrt(v + EPS)
        return s, b - m * s

    # Tception conv(1,k) 'same' as one banded matmul; per-oc blocks padded to OCB=256 lanes,
    # columns inside a block ordered (branch, w).  BN_t scale folded in (LeakyReLU is
    # positive-homogeneous for s > 0); bias stays in-kernel.
    st, bt = bn_fold(p['bn_t'])
    # TODO(synk): the scale fold requires g/sqrt(var+eps) > 0; true for this init, an arbitrary
    # checkpoint with negative gamma would need the unfolded BN_t path.
    assert np.all(st > 0.0)
    band = np.zeros((W, NUM_T * OCB), np.float32)
    for br, k in enumerate(KS):
        wbr = np.asarray(p['wt'][br], np.float32)                     # (NUM_T, k)
        pad = (k - 1) // 2
        for oc in range(NUM_T):
            for w_out in range(W):
                col = oc * OCB + br * W + w_out
                for j in range(k):
                    i = w_out + j - pad
                    if 0 <= i < W:
                        band[i, col] = wbr[oc, j] * st[oc]
    d['band'] = jnp.asarray(band, dtype=BF16)                         # bf16 halves the big DMA

    bnt_b = np.zeros((1, NUM_T * OCB), np.float32)
    for oc in range(NUM_T):
        bnt_b[0, oc * OCB:oc * OCB + TW3] = bt[oc]
    d['bnt_b'] = jnp.asarray(bnt_b)

    # fuse_T AvgPool2d((1,3),(1,3)) as matmuls placing batch b on lane half b.  Entries are
    # 1.0 (exact); the 1/3 is folded into every downstream consumer of the pooled tensor.
    p3 = np.zeros((2, OCB, BW), np.float32)
    for j in range(TW3):
        p3[0, j, 0 * W + j // 3] = 1.0
        p3[1, j, 1 * W + j // 3] = 1.0
    d['p3l'] = jnp.asarray(p3[0])
    d['p3r'] = jnp.asarray(p3[1])

    # Sception1 (H,1) and Sception2 (H/2,1) stride (H/2,1), stacked into one LHS against
    # a_all rows (ic, h); includes the /3 pooling fold.
    ws1 = np.asarray(p['ws1'], np.float32).reshape(NUM_T, NUM_T * H)
    ws2 = np.asarray(p['ws2'], np.float32)                            # (NUM_T, NUM_T, H2)
    w2a = np.zeros((NUM_T, NUM_T * H), np.float32)
    w2b = np.zeros((NUM_T, NUM_T * H), np.float32)
    for ic in range(NUM_T):
        w2a[:, ic * H:ic * H + H2] = ws2[:, ic, :]                    # output height r = 0
        w2b[:, ic * H + H2:(ic + 1) * H] = ws2[:, ic, :]              # output height r = 1
    d['ws'] = jnp.asarray(np.concatenate([ws1, w2a, w2b], axis=0) / 3.0)   # (24, 64)

    ss, sb = bn_fold(p['bn_s'])
    d['bns_s'] = jnp.asarray(np.tile(ss, 3).reshape(3 * NUM_T, 1))
    d['bns_b'] = jnp.asarray(np.tile(sb, 3).reshape(3 * NUM_T, 1))

    # fusion 1x1 conv: block-diagonal over the 3 Sception height rows, and one stacked
    # row-selection matrix over the 8 pooled height rows (with the /3 fold).
    wf = np.asarray(p['wf'], np.float32)                              # (NUM_S, NUM_T)
    wf3 = np.zeros((3 * NUM_S, 3 * NUM_T), np.float32)
    for r in range(3):
        wf3[r * NUM_S:(r + 1) * NUM_S, r * NUM_T:(r + 1) * NUM_T] = wf
    d['wf3'] = jnp.asarray(wf3)
    wfsel = np.zeros((H * NUM_S, NUM_T * H), np.float32)
    for h in range(H):
        for ic in range(NUM_T):
            wfsel[h * NUM_S:(h + 1) * NUM_S, ic * H + h] = wf[:, ic] / 3.0
    d['wfsel'] = jnp.asarray(wfsel)

    fs, fbv = bn_fold(p['bn_f'])
    d['bnf_s3'] = jnp.asarray(np.tile(fs, 3).reshape(3 * NUM_S, 1))
    d['bnf_b3'] = jnp.asarray(np.tile(fbv, 3).reshape(3 * NUM_S, 1))
    d['bnf_s8'] = jnp.asarray(np.tile(fs, H).reshape(H * NUM_S, 1))
    d['bnf_b8'] = jnp.asarray(np.tile(fbv, H).reshape(H * NUM_S, 1))

    # adjust_height Conv2d(NUM_S, NUM_S, (4,1)) with bias: LHS rows oc, cols (dh, ic).
    wa = np.asarray(p['wa'], np.float32)                              # (oc, ic, dh)
    d['wa2'] = jnp.asarray(np.transpose(wa, (0, 2, 1)).reshape(NUM_S, 4 * NUM_S))
    d['ba'] = jnp.asarray(np.asarray(p['ba'], np.float32).reshape(NUM_S, 1))
    return d


# ------------------------------------- main -----------------------------------------------
if __name__ == "__main__":
    key = jax.random.PRNGKey(0)
    kx, kp = jax.random.split(key)
    x = jax.random.normal(kx, (B, IN_CH, H, W), F32)                  # NCHW input like PyTorch
    params = init_params(kp)
    derived = build_derived(params)

    out = doubleconv_tsception_forward(x, derived)
    out = jax.block_until_ready(out)
    assert out.shape == (B, NUM_S, H_OUT, W), out.shape
    assert bool(jnp.all(jnp.isfinite(out)))
    print("KERNEL_OK")
</pallas_src>

<mosaic_0001>
module attributes {stable_mosaic.version = 11 : i64} {
  func.func @_fused_kernel(%arg0: memref<16x64xbf16, #tpu.memory_space<vmem>>, %arg1: memref<64x2048xbf16, #tpu.memory_space<vmem>>, %arg2: memref<1x2048xf32, #tpu.memory_space<vmem>>, %arg3: memref<256x128xf32, #tpu.memory_space<vmem>>, %arg4: memref<256x128xf32, #tpu.memory_space<vmem>>, %arg5: memref<24x64xf32, #tpu.memory_space<vmem>>, %arg6: memref<24x1xf32, #tpu.memory_space<vmem>>, %arg7: memref<24x1xf32, #tpu.memory_space<vmem>>, %arg8: memref<24x24xf32, #tpu.memory_space<vmem>>, %arg9: memref<64x64xf32, #tpu.memory_space<vmem>>, %arg10: memref<24x1xf32, #tpu.memory_space<vmem>>, %arg11: memref<24x1xf32, #tpu.memory_space<vmem>>, %arg12: memref<64x1xf32, #tpu.memory_space<vmem>>, %arg13: memref<64x1xf32, #tpu.memory_space<vmem>>, %arg14: memref<8x32xf32, #tpu.memory_space<vmem>>, %arg15: memref<8x1xf32, #tpu.memory_space<vmem>>, %arg16: memref<8x1024xf32, #tpu.memory_space<vmem>>, %arg17: memref<64x128xf32, #tpu.memory_space<vmem>>) attributes {dimension_semantics = [], scalar_prefetch = 0 : i64, scratch_operands = 1 : i64, tpu.core_type = #tpu.core_type<tc>} {
    %c0 = arith.constant 0 : index
    %c0_0 = arith.constant 0 : index
    %0 = vector.load %arg0[%c0, %c0_0] : memref<16x64xbf16, #tpu.memory_space<vmem>>, vector<16x64xbf16>
    %c0_1 = arith.constant 0 : index
    %c0_2 = arith.constant 0 : index
    %1 = vector.load %arg1[%c0_1, %c0_2] : memref<64x2048xbf16, #tpu.memory_space<vmem>>, vector<64x2048xbf16>
    %cst = arith.constant dense<0.000000e+00> : vector<16x2048xf32>
    %2 = tpu.matmul %0, %1, %cst {dimension_numbers = #tpu.dot_dimension_numbers<[1], [0], [0], [1], [0, 0, 1, 1], [], []>} : vector<16x64xbf16>, vector<64x2048xbf16>, vector<16x2048xf32> -> vector<16x2048xf32>
    %cst_3 = arith.constant 0.000000e+00 : f32
    %3 = vector.broadcast %cst_3 : f32 to vector<16x2048xf32>
    %4 = arith.cmpf oge, %2, %3 : vector<16x2048xf32>
    %cst_4 = arith.constant 0.00999999977 : f32
    %5 = vector.broadcast %cst_4 : f32 to vector<16x2048xf32>
    %6 = arith.mulf %5, %2 : vector<16x2048xf32>
    %7 = arith.select %4, %2, %6 : vector<16x2048xi1>, vector<16x2048xf32>
    %c0_5 = arith.constant 0 : index
    %c0_6 = arith.constant 0 : index
    %8 = vector.load %arg2[%c0_5, %c0_6] : memref<1x2048xf32, #tpu.memory_space<vmem>>, vector<1x2048xf32>
    %9 = vector.broadcast %8 : vector<1x2048xf32> to vector<16x2048xf32>
    %10 = arith.addf %7, %9 : vector<16x2048xf32>
    %cst_7 = arith.constant 0.000000e+00 : f32
    %11 = vector.broadcast %cst_7 : f32 to vector<16x2048xf32>
    %12 = arith.maximumf %10, %11 : vector<16x2048xf32>
    %c0_8 = arith.constant 0 : index
    %c0_9 = arith.constant 0 : index
    %13 = vector.load %arg3[%c0_8, %c0_9] : memref<256x128xf32, #tpu.memory_space<vmem>>, vector<256x128xf32>
    %c0_10 = arith.constant 0 : index
    %c0_11 = arith.constant 0 : index
    %14 = vector.load %arg4[%c0_10, %c0_11] : memref<256x128xf32, #tpu.memory_space<vmem>>, vector<256x128xf32>
    %15 = vector.extract_strided_slice %12 {offsets = [0, 0], sizes = [8, 256], strides = [1, 1]} : vector<16x2048xf32> to vector<8x256xf32>
    %cst_12 = arith.constant dense<0.000000e+00> : vector<8x128xf32>
    %16 = tpu.matmul %15, %13, %cst_12 {dimension_numbers = #tpu.dot_dimension_numbers<[1], [0], [0], [1], [0, 0, 1, 1], [], []>} : vector<8x256xf32>, vector<256x128xf32>, vector<8x128xf32> -> vector<8x128xf32>
    %17 = vector.extract_strided_slice %12 {offsets = [8, 0], sizes = [8, 256], strides = [1, 1]} : vector<16x2048xf32> to vector<8x256xf32>
    %cst_13 = arith.constant dense<0.000000e+00> : vector<8x128xf32>
    %18 = tpu.matmul %17, %14, %cst_13 {dimension_numbers = #tpu.dot_dimension_numbers<[1], [0], [0], [1], [0, 0, 1, 1], [], []>} : vector<8x256xf32>, vector<256x128xf32>, vector<8x128xf32> -> vector<8x128xf32>
    %19 = arith.addf %16, %18 : vector<8x128xf32>
    %c0_14 = arith.constant 0 : index
    %c0_15 = arith.constant 0 : index
    %20 = vector.load %arg17[%c0_14, %c0_15] : memref<64x128xf32, #tpu.memory_space<vmem>>, vector<8x128xf32>
    tpu.vector_store %arg17[%c0_14, %c0_15], %19 {strides = array<i32>} : memref<64x128xf32, #tpu.memory_space<vmem>>, vector<8x128xf32>,
    %21 = vector.extract_strided_slice %12 {offsets = [0, 256], sizes = [8, 256], strides = [1, 1]} : vector<16x2048xf32> to vector<8x256xf32>
    %cst_16 = arith.constant dense<0.000000e+00> : vector<8x128xf32>
    %22 = tpu.matmul %21, %13, %cst_16 {dimension_numbers = #tpu.dot_dimension_numbers<[1], [0], [0], [1], [0, 0, 1, 1], [], []>} : vector<8x256xf32>, vector<256x128xf32>, vector<8x128xf32> -> vector<8x128xf32>
    %23 = vector.extract_strided_slice %12 {offsets = [8, 256], sizes = [8, 256], strides = [1, 1]} : vector<16x2048xf32> to vector<8x256xf32>
    %cst_17 = arith.constant dense<0.000000e+00> : vector<8x128xf32>
    %24 = tpu.matmul %23, %14, %cst_17 {dimension_numbers = #tpu.dot_dimension_numbers<[1], [0], [0], [1], [0, 0, 1, 1], [], []>} : vector<8x256xf32>, vector<256x128xf32>, vector<8x128xf32> -> vector<8x128xf32>
    %25 = arith.addf %22, %24 : vector<8x128xf32>
    %c8 = arith.constant 8 : index
    %c0_18 = arith.constant 0 : index
    %26 = vector.load %arg17[%c8, %c0_18] : memref<64x128xf32, #tpu.memory_space<vmem>>, vector<8x128xf32>
    tpu.vector_store %arg17[%c8, %c0_18], %25 {strides = array<i32>} : memref<64x128xf32, #tpu.memory_space<vmem>>, vector<8x128xf32>,
    %27 = vector.extract_strided_slice %12 {offsets = [0, 512], sizes = [8, 256], strides = [1, 1]} : vector<16x2048xf32> to vector<8x256xf32>
    %cst_19 = arith.constant dense<0.000000e+00> : vector<8x128xf32>
    %28 = tpu.matmul %27, %13, %cst_19 {dimension_numbers = #tpu.dot_dimension_numbers<[1], [0], [0], [1], [0, 0, 1, 1], [], []>} : vector<8x256xf32>, vector<256x128xf32>, vector<8x128xf32> -> vector<8x128xf32>
    %29 = vector.extract_strided_slice %12 {offsets = [8, 512], sizes = [8, 256], strides = [1, 1]} : vector<16x2048xf32> to vector<8x256xf32>
    %cst_20 = arith.constant dense<0.000000e+00> : vector<8x128xf32>
    %30 = tpu.matmul %29, %14, %cst_20 {dimension_numbers = #tpu.dot_dimension_numbers<[1], [0], [0], [1], [0, 0, 1, 1], [], []>} : vector<8x256xf32>, vector<256x128xf32>, vector<8x128xf32> -> vector<8x128xf32>
    %31 = arith.addf %28, %30 : vector<8x128xf32>
    %c16 = arith.constant 16 : index
    %c0_21 = arith.constant 0 : index
    %32 = vector.load %arg17[%c16, %c0_21] : memref<64x128xf32, #tpu.memory_space<vmem>>, vector<8x128xf32>
    tpu.vector_store %arg17[%c16, %c0_21], %31 {strides = array<i32>} : memref<64x128xf32, #tpu.memory_space<vmem>>, vector<8x128xf32>,
    %33 = vector.extract_strided_slice %12 {offsets = [0, 768], sizes = [8, 256], strides = [1, 1]} : vector<16x2048xf32> to vector<8x256xf32>
    %cst_22 = arith.constant dense<0.000000e+00> : vector<8x128xf32>
    %34 = tpu.matmul %33, %13, %cst_22 {dimension_numbers = #tpu.dot_dimension_numbers<[1], [0], [0], [1], [0, 0, 1, 1], [], []>} : vector<8x256xf32>, vector<256x128xf32>, vector<8x128xf32> -> vector<8x128xf32>
    %35 = vector.extract_strided_slice %12 {offsets = [8, 768], sizes = [8, 256], strides = [1, 1]} : vector<16x2048xf32> to vector<8x256xf32>
    %cst_23 = arith.constant dense<0.000000e+00> : vector<8x128xf32>
    %36 = tpu.matmul %35, %14, %cst_23 {dimension_numbers = #tpu.dot_dimension_numbers<[1], [0], [0], [1], [0, 0, 1, 1], [], []>} : vector<8x256xf32>, vector<256x128xf32>, vector<8x128xf32> -> vector<8x128xf32>
    %37 = arith.addf %34, %36 : vector<8x128xf32>
    %c24 = arith.constant 24 : index
    %c0_24 = arith.constant 0 : index
    %38 = vector.load %arg17[%c24, %c0_24] : memref<64x128xf32, #tpu.memory_space<vmem>>, vector<8x128xf32>
    tpu.vector_store %arg17[%c24, %c0_24], %37 {strides = array<i32>} : memref<64x128xf32, #tpu.memory_space<vmem>>, vector<8x128xf32>,
    %39 = vector.extract_strided_slice %12 {offsets = [0, 1024], sizes = [8, 256], strides = [1, 1]} : vector<16x2048xf32> to vector<8x256xf32>
    %cst_25 = arith.constant dense<0.000000e+00> : vector<8x128xf32>
    %40 = tpu.matmul %39, %13, %cst_25 {dimension_numbers = #tpu.dot_dimension_numbers<[1], [0], [0], [1], [0, 0, 1, 1], [], []>} : vector<8x256xf32>, vector<256x128xf32>, vector<8x128xf32> -> vector<8x128xf32>
    %41 = vector.extract_strided_slice %12 {offsets = [8, 1024], sizes = [8, 256], strides = [1, 1]} : vector<16x2048xf32> to vector<8x256xf32>
    %cst_26 = arith.constant dense<0.000000e+00> : vector<8x128xf32>
    %42 = tpu.matmul %41, %14, %cst_26 {dimension_numbers = #tpu.dot_dimension_numbers<[1], [0], [0], [1], [0, 0, 1, 1], [], []>} : vector<8x256xf32>, vector<256x128xf32>, vector<8x128xf32> -> vector<8x128xf32>
    %43 = arith.addf %40, %42 : vector<8x128xf32>
    %c32 = arith.constant 32 : index
    %c0_27 = arith.constant 0 : index
    %44 = vector.load %arg17[%c32, %c0_27] : memref<64x128xf32, #tpu.memory_space<vmem>>, vector<8x128xf32>
    tpu.vector_store %arg17[%c32, %c0_27], %43 {strides = array<i32>} : memref<64x128xf32, #tpu.memory_space<vmem>>, vector<8x128xf32>,
    %45 = vector.extract_strided_slice %12 {offsets = [0, 1280], sizes = [8, 256], strides = [1, 1]} : vector<16x2048xf32> to vector<8x256xf32>
    %cst_28 = arith.constant dense<0.000000e+00> : vector<8x128xf32>
    %46 = tpu.matmul %45, %13, %cst_28 {dimension_numbers = #tpu.dot_dimension_numbers<[1], [0], [0], [1], [0, 0, 1, 1], [], []>} : vector<8x256xf32>, vector<256x128xf32>, vector<8x128xf32> -> vector<8x128xf32>
    %47 = vector.extract_strided_slice %12 {offsets = [8, 1280], sizes = [8, 256], strides = [1, 1]} : vector<16x2048xf32> to vector<8x256xf32>
    %cst_29 = arith.constant dense<0.000000e+00> : vector<8x128xf32>
    %48 = tpu.matmul %47, %14, %cst_29 {dimension_numbers = #tpu.dot_dimension_numbers<[1], [0], [0], [1], [0, 0, 1, 1], [], []>} : vector<8x256xf32>, vector<256x128xf32>, vector<8x128xf32> -> vector<8x128xf32>
    %49 = arith.addf %46, %48 : vector<8x128xf32>
    %c40 = arith.constant 40 : index
    %c0_30 = arith.constant 0 : index
    %50 = vector.load %arg17[%c40, %c0_30] : memref<64x128xf32, #tpu.memory_space<vmem>>, vector<8x128xf32>
    tpu.vector_store %arg17[%c40, %c0_30], %49 {strides = array<i32>} : memref<64x128xf32, #tpu.memory_space<vmem>>, vector<8x128xf32>,
    %51 = vector.extract_strided_slice %12 {offsets = [0, 1536], sizes = [8, 256], strides = [1, 1]} : vector<16x2048xf32> to vector<8x256xf32>
    %cst_31 = arith.constant dense<0.000000e+00> : vector<8x128xf32>
    %52 = tpu.matmul %51, %13, %cst_31 {dimension_numbers = #tpu.dot_dimension_numbers<[1], [0], [0], [1], [0, 0, 1, 1], [], []>} : vector<8x256xf32>, vector<256x128xf32>, vector<8x128xf32> -> vector<8x128xf32>
    %53 = vector.extract_strided_slice %12 {offsets = [8, 1536], sizes = [8, 256], strides = [1, 1]} : vector<16x2048xf32> to vector<8x256xf32>
    %cst_32 = arith.constant dense<0.000000e+00> : vector<8x128xf32>
    %54 = tpu.matmul %53, %14, %cst_32 {dimension_numbers = #tpu.dot_dimension_numbers<[1], [0], [0], [1], [0, 0, 1, 1], [], []>} : vector<8x256xf32>, vector<256x128xf32>, vector<8x128xf32> -> vector<8x128xf32>
    %55 = arith.addf %52, %54 : vector<8x128xf32>
    %c48 = arith.constant 48 : index
    %c0_33 = arith.constant 0 : index
    %56 = vector.load %arg17[%c48, %c0_33] : memref<64x128xf32, #tpu.memory_space<vmem>>, vector<8x128xf32>
    tpu.vector_store %arg17[%c48, %c0_33], %55 {strides = array<i32>} : memref<64x128xf32, #tpu.memory_space<vmem>>, vector<8x128xf32>,
    %57 = vector.extract_strided_slice %12 {offsets = [0, 1792], sizes = [8, 256], strides = [1, 1]} : vector<16x2048xf32> to vector<8x256xf32>
    %cst_34 = arith.constant dense<0.000000e+00> : vector<8x128xf32>
    %58 = tpu.matmul %57, %13, %cst_34 {dimension_numbers = #tpu.dot_dimension_numbers<[1], [0], [0], [1], [0, 0, 1, 1], [], []>} : vector<8x256xf32>, vector<256x128xf32>, vector<8x128xf32> -> vector<8x128xf32>
    %59 = vector.extract_strided_slice %12 {offsets = [8, 1792], sizes = [8, 256], strides = [1, 1]} : vector<16x2048xf32> to vector<8x256xf32>
    %cst_35 = arith.constant dense<0.000000e+00> : vector<8x128xf32>
    %60 = tpu.matmul %59, %14, %cst_35 {dimension_numbers = #tpu.dot_dimension_numbers<[1], [0], [0], [1], [0, 0, 1, 1], [], []>} : vector<8x256xf32>, vector<256x128xf32>, vector<8x128xf32> -> vector<8x128xf32>
    %61 = arith.addf %58, %60 : vector<8x128xf32>
    %c56 = arith.constant 56 : index
    %c0_36 = arith.constant 0 : index
    %62 = vector.load %arg17[%c56, %c0_36] : memref<64x128xf32, #tpu.memory_space<vmem>>, vector<8x128xf32>
    tpu.vector_store %arg17[%c56, %c0_36], %61 {strides = array<i32>} : memref<64x128xf32, #tpu.memory_space<vmem>>, vector<8x128xf32>,
    %c0_37 = arith.constant 0 : index
    %c0_38 = arith.constant 0 : index
    %63 = vector.load %arg17[%c0_37, %c0_38] : memref<64x128xf32, #tpu.memory_space<vmem>>, vector<64x128xf32>
    %c0_39 = arith.constant 0 : index
    %c0_40 = arith.constant 0 : index
    %64 = vector.load %arg5[%c0_39, %c0_40] : memref<24x64xf32, #tpu.memory_space<vmem>>, vector<24x64xf32>
    %cst_41 = arith.constant dense<0.000000e+00> : vector<24x128xf32>
    %65 = tpu.matmul %64, %63, %cst_41 {dimension_numbers = #tpu.dot_dimension_numbers<[1], [0], [0], [1], [0, 0, 1, 1], [], []>} : vector<24x64xf32>, vector<64x128xf32>, vector<24x128xf32> -> vector<24x128xf32>
    %cst_42 = arith.constant 0.000000e+00 : f32
    %66 = vector.broadcast %cst_42 : f32 to vector<24x128xf32>
    %67 = arith.cmpf oge, %65, %66 : vector<24x128xf32>
    %cst_43 = arith.constant 0.00999999977 : f32
    %68 = vector.broadcast %cst_43 : f32 to vector<24x128xf32>
    %69 = arith.mulf %68, %65 : vector<24x128xf32>
    %70 = arith.select %67, %65, %69 : vector<24x128xi1>, vector<24x128xf32>
    %c0_44 = arith.constant 0 : index
    %c0_45 = arith.constant 0 : index
    %71 = vector.load %arg6[%c0_44, %c0_45] : memref<24x1xf32, #tpu.memory_space<vmem>>, vector<24x1xf32>
    %72 = vector.broadcast %71 : vector<24x1xf32> to vector<24x128xf32>
    %73 = arith.mulf %70, %72 : vector<24x128xf32>
    %c0_46 = arith.constant 0 : index
    %c0_47 = arith.constant 0 : index
    %74 = vector.load %arg7[%c0_46, %c0_47] : memref<24x1xf32, #tpu.memory_space<vmem>>, vector<24x1xf32>
    %75 = vector.broadcast %74 : vector<24x1xf32> to vector<24x128xf32>
    %76 = arith.addf %73, %75 : vector<24x128xf32>
    %cst_48 = arith.constant 0.000000e+00 : f32
    %77 = vector.broadcast %cst_48 : f32 to vector<24x128xf32>
    %78 = arith.maximumf %76, %77 : vector<24x128xf32>
    %c0_49 = arith.constant 0 : index
    %c0_50 = arith.constant 0 : index
    %79 = vector.load %arg8[%c0_49, %c0_50] : memref<24x24xf32, #tpu.memory_space<vmem>>, vector<24x24xf32>
    %cst_51 = arith.constant dense<0.000000e+00> : vector<24x128xf32>
    %80 = tpu.matmul %79, %78, %cst_51 {dimension_numbers = #tpu.dot_dimension_numbers<[1], [0], [0], [1], [0, 0, 1, 1], [], []>} : vector<24x24xf32>, vector<24x128xf32>, vector<24x128xf32> -> vector<24x128xf32>
    %cst_52 = arith.constant 0.000000e+00 : f32
    %81 = vector.broadcast %cst_52 : f32 to vector<24x128xf32>
    %82 = arith.cmpf oge, %80, %81 : vector<24x128xf32>
    %cst_53 = arith.constant 0.00999999977 : f32
    %83 = vector.broadcast %cst_53 : f32 to vector<24x128xf32>
    %84 = arith.mulf %83, %80 : vector<24x128xf32>
    %85 = arith.select %82, %80, %84 : vector<24x128xi1>, vector<24x128xf32>
    %c0_54 = arith.constant 0 : index
    %c0_55 = arith.constant 0 : index
    %86 = vector.load %arg10[%c0_54, %c0_55] : memref<24x1xf32, #tpu.memory_space<vmem>>, vector<24x1xf32>
    %87 = vector.broadcast %86 : vector<24x1xf32> to vector<24x128xf32>
    %88 = arith.mulf %85, %87 : vector<24x128xf32>
    %c0_56 = arith.constant 0 : index
    %c0_57 = arith.constant 0 : index
    %89 = vector.load %arg11[%c0_56, %c0_57] : memref<24x1xf32, #tpu.memory_space<vmem>>, vector<24x1xf32>
    %90 = vector.broadcast %89 : vector<24x1xf32> to vector<24x128xf32>
    %91 = arith.addf %88, %90 : vector<24x128xf32>
    %cst_58 = arith.constant 0.000000e+00 : f32
    %92 = vector.broadcast %cst_58 : f32 to vector<24x128xf32>
    %93 = arith.maximumf %91, %92 : vector<24x128xf32>
    %c0_59 = arith.constant 0 : index
    %c0_60 = arith.constant 0 : index
    %94 = vector.load %arg9[%c0_59, %c0_60] : memref<64x64xf32, #tpu.memory_space<vmem>>, vector<64x64xf32>
    %cst_61 = arith.constant dense<0.000000e+00> : vector<64x128xf32>
    %95 = tpu.matmul %94, %63, %cst_61 {dimension_numbers = #tpu.dot_dimension_numbers<[1], [0], [0], [1], [0, 0, 1, 1], [], []>} : vector<64x64xf32>, vector<64x128xf32>, vector<64x128xf32> -> vector<64x128xf32>
    %cst_62 = arith.constant 0.000000e+00 : f32
    %96 = vector.broadcast %cst_62 : f32 to vector<64x128xf32>
    %97 = arith.cmpf oge, %95, %96 : vector<64x128xf32>
    %cst_63 = arith.constant 0.00999999977 : f32
    %98 = vector.broadcast %cst_63 : f32 to vector<64x128xf32>
    %99 = arith.mulf %98, %95 : vector<64x128xf32>
    %100 = arith.select %97, %95, %99 : vector<64x128xi1>, vector<64x128xf32>
    %c0_64 = arith.constant 0 : index
    %c0_65 = arith.constant 0 : index
    %101 = vector.load %arg12[%c0_64, %c0_65] : memref<64x1xf32, #tpu.memory_space<vmem>>, vector<64x1xf32>
    %102 = vector.broadcast %101 : vector<64x1xf32> to vector<64x128xf32>
    %103 = arith.mulf %100, %102 : vector<64x128xf32>
    %c0_66 = arith.constant 0 : index
    %c0_67 = arith.constant 0 : index
    %104 = vector.load %arg13[%c0_66, %c0_67] : memref<64x1xf32, #tpu.memory_space<vmem>>, vector<64x1xf32>
    %105 = vector.broadcast %104 : vector<64x1xf32> to vector<64x128xf32>
    %106 = arith.addf %103, %105 : vector<64x128xf32>
    %cst_68 = arith.constant 0.000000e+00 : f32
    %107 = vector.broadcast %cst_68 : f32 to vector<64x128xf32>
    %108 = arith.maximumf %106, %107 : vector<64x128xf32>
    %109 = vector.extract_strided_slice %93 {offsets = [0, 0], sizes = [8, 128], strides = [1, 1]} : vector<24x128xf32> to vector<8x128xf32>
    %110 = vector.extract_strided_slice %93 {offsets = [8, 0], sizes = [8, 128], strides = [1, 1]} : vector<24x128xf32> to vector<8x128xf32>
    %111 = vector.extract_strided_slice %93 {offsets = [16, 0], sizes = [8, 128], strides = [1, 1]} : vector<24x128xf32> to vector<8x128xf32>
    %112 = vector.extract_strided_slice %108 {offsets = [0, 0], sizes = [8, 128], strides = [1, 1]} : vector<64x128xf32> to vector<8x128xf32>
    %113 = vector.extract_strided_slice %108 {offsets = [8, 0], sizes = [8, 128], strides = [1, 1]} : vector<64x128xf32> to vector<8x128xf32>
    %114 = vector.extract_strided_slice %108 {offsets = [16, 0], sizes = [8, 128], strides = [1, 1]} : vector<64x128xf32> to vector<8x128xf32>
    %115 = vector.extract_strided_slice %108 {offsets = [24, 0], sizes = [8, 128], strides = [1, 1]} : vector<64x128xf32> to vector<8x128xf32>
    %116 = vector.extract_strided_slice %108 {offsets = [32, 0], sizes = [8, 128], strides = [1, 1]} : vector<64x128xf32> to vector<8x128xf32>
    %117 = vector.extract_strided_slice %108 {offsets = [40, 0], sizes = [8, 128], strides = [1, 1]} : vector<64x128xf32> to vector<8x128xf32>
    %118 = vector.extract_strided_slice %108 {offsets = [48, 0], sizes = [8, 128], strides = [1, 1]} : vector<64x128xf32> to vector<8x128xf32>
    %119 = vector.extract_strided_slice %108 {offsets = [56, 0], sizes = [8, 128], strides = [1, 1]} : vector<64x128xf32> to vector<8x128xf32>
    %120 = tpu.concatenate %109, %110, %111, %112, %113, %114, %115, %116 in 1 : vector<8x128xf32>, vector<8x128xf32>, vector<8x128xf32>, vector<8x128xf32>, vector<8x128xf32>, vector<8x128xf32>, vector<8x128xf32>, vector<8x128xf32> -> vector<8x1024xf32>
    %121 = tpu.concatenate %110, %111, %112, %113, %114, %115, %116, %117 in 1 : vector<8x128xf32>, vector<8x128xf32>, vector<8x128xf32>, vector<8x128xf32>, vector<8x128xf32>, vector<8x128xf32>, vector<8x128xf32>, vector<8x128xf32> -> vector<8x1024xf32>
    %122 = tpu.concatenate %111, %112, %113, %114, %115, %116, %117, %118 in 1 : vector<8x128xf32>, vector<8x128xf32>, vector<8x128xf32>, vector<8x128xf32>, vector<8x128xf32>, vector<8x128xf32>, vector<8x128xf32>, vector<8x128xf32> -> vector<8x1024xf32>
    %123 = tpu.concatenate %112, %113, %114, %115, %116, %117, %118, %119 in 1 : vector<8x128xf32>, vector<8x128xf32>, vector<8x128xf32>, vector<8x128xf32>, vector<8x128xf32>, vector<8x128xf32>, vector<8x128xf32>, vector<8x128xf32> -> vector<8x1024xf32>
    %124 = tpu.concatenate %120, %121, %122, %123 in 0 : vector<8x1024xf32>, vector<8x1024xf32>, vector<8x1024xf32>, vector<8x1024xf32> -> vector<32x1024xf32>
    %c0_69 = arith.constant 0 : index
    %c0_70 = arith.constant 0 : index
    %125 = vector.load %arg15[%c0_69, %c0_70] : memref<8x1xf32, #tpu.memory_space<vmem>>, vector<8x1xf32>
    %c0_71 = arith.constant 0 : index
    %c0_72 = arith.constant 0 : index
    %126 = vector.load %arg14[%c0_71, %c0_72] : memref<8x32xf32, #tpu.memory_space<vmem>>, vector<8x32xf32>
    %cst_73 = arith.constant dense<0.000000e+00> : vector<8x1024xf32>
    %127 = tpu.matmul %126, %124, %cst_73 {dimension_numbers = #tpu.dot_dimension_numbers<[1], [0], [0], [1], [0, 0, 1, 1], [], []>} : vector<8x32xf32>, vector<32x1024xf32>, vector<8x1024xf32> -> vector<8x1024xf32>
    %128 = vector.broadcast %125 : vector<8x1xf32> to vector<8x1024xf32>
    %129 = arith.addf %128, %127 : vector<8x1024xf32>
    %c0_74 = arith.constant 0 : index
    %c0_75 = arith.constant 0 : index
    %130 = vector.load %arg16[%c0_74, %c0_75] : memref<8x1024xf32, #tpu.memory_space<vmem>>, vector<8x1024xf32>
    tpu.vector_store %arg16[%c0_74, %c0_75], %129 {strides = array<i32>} : memref<8x1024xf32, #tpu.memory_space<vmem>>, vector<8x1024xf32>,
    return
  }
}

</mosaic_0001>

<bundles_post_ra>
// kernel: doubleconv_tsception_forward.1
= control target key start
LH: loop header
LB: loop body
LE: loop exit
PB: predicated region body
PF: predicated region fallthrough
CT: control target
= control target key end

     0   :  { %s4033_s0 = inlined_call_operand.vmem [shape: bf16[16,64], index: 0, kind: input, shape index: {}]   ;;  %s4034_s1 = inlined_call_operand.hbm [shape: bf16[64,2048], index: 1, kind: input, shape index: {}]   ;;  %s4035_s2 = inlined_call_operand.vmem [shape: f32[1,2048], index: 2, kind: input, shape index: {}]   ;;  %s4036_s3 = inlined_call_operand.hbm [shape: f32[256,128], index: 3, kind: input, shape index: {}]   ;;  %s4037_s4 = inlined_call_operand.hbm [shape: f32[256,128], index: 4, kind: input, shape index: {}]   ;;  %s4038_s5 = inlined_call_operand.vmem [shape: f32[24,64], index: 5, kind: input, shape index: {}]   ;;  %s4039_s6 = inlined_call_operand.vmem [shape: f32[24,1], index: 6, kind: input, shape index: {}]   ;;  %s4040_s7 = inlined_call_operand.vmem [shape: f32[24,1], index: 7, kind: input, shape index: {}]   ;;  %s4041_s8 = inlined_call_operand.vmem [shape: f32[24,24], index: 8, kind: input, shape index: {}]   ;;  %s4042_s9 = inlined_call_operand.vmem [shape: f32[64,64], index: 9, kind: input, shape index: {}]   ;;  %s4043_s10 = inlined_call_operand.vmem [shape: f32[24,1], index: 10, kind: input, shape index: {}]   ;;  %s4044_s11 = inlined_call_operand.vmem [shape: f32[24,1], index: 11, kind: input, shape index: {}]   ;;  %s4045_s12 = inlined_call_operand.vmem [shape: f32[64,1], index: 12, kind: input, shape index: {}]   ;;  %s4046_s13 = inlined_call_operand.vmem [shape: f32[64,1], index: 13, kind: input, shape index: {}]   ;;  %s4047_s14 = inlined_call_operand.vmem [shape: f32[8,32], index: 14, kind: input, shape index: {}]   ;;  %s4048_s15 = inlined_call_operand.vmem [shape: f32[8,1], index: 15, kind: input, shape index: {}]   ;;  %s4049_s16 = inlined_call_operand.vmem [shape: f32[8,1024], index: 16, kind: output, shape index: {}]  }
   0x1   :  { %4137 = sst [smem:[#allocation45_spill]] %s4033_s0 }
   0x2   :  { %21 = vsyncpa [#allocation4], 0 }
   0x3   :  { %22 = vsyncpa [#allocation6], 0  ;;  %s44_s23 = sshll.u32 %s4036_s3, 4  ;;  %s2745_s24 = smov [#allocation5]   ;;  %s45_s23 = int_to_ptr.hbm [resolvable:$true] %s44_s23 }
   0x4   :  { %s46_s25 = sshll.u32 %s2745_s24, 4  ;;  %s29_s28 = sshll.u32 %s4034_s1, 4  ;;  %s47_s25 = int_to_ptr.vmem [resolvable:$true] %s46_s25  ;;  %s30_s28 = int_to_ptr.hbm [resolvable:$true] %s29_s28 }
   0x5   :  { %s2746_s29 = smov 128   ;;  %s2747_s30 = smov 8  }
   0x6   :  { %52 = dma.hbm_to_vmem [thread:$0]  %s45_s23, 4096, %s47_s25, [#allocation6], %s2746_s29, %s2746_s29, %s2747_s30  }
   0x7   :  { %s2748_s0 = smov [#allocation3]   ;;  %s2749_s18 = smov 1024  }
   0x8   :  { %s31_s17 = sshll.u32 %s2748_s0, 4  ;;  %s2750_s19 = smov 64   ;;  %s32_s17 = int_to_ptr.vmem [resolvable:$true] %s31_s17 }
   0x9   :  { %37 = dma.hbm_to_vmem [thread:$0]  %s30_s28, 8192, %s32_s17, [#allocation4], %s2749_s18, %s2749_s18, %s2750_s19  }
   0xa   :  { %s57_s21 = sshll.u32 %s4037_s4, 4  ;;  %s2751_s22 = smov [#allocation7]   ;;  %s58_s21 = int_to_ptr.hbm [resolvable:$true] %s57_s21 }
   0xb   :  { %s59_s24 = sshll.u32 %s2751_s22, 4  ;;  %s60_s24 = int_to_ptr.vmem [resolvable:$true] %s59_s24 }
   0xc   :  { %65 = dma.hbm_to_vmem [thread:$0]  %s58_s21, 4096, %s60_s24, [#allocation6], %s2746_s29, %s2746_s29, %s2747_s30  }
   0xd   :  { %2741 = dma.done.wait [#allocation4], 8192  }
   0xe   :  { %2742 = vsyncadd [#allocation4], 4294959104 }
   0xf   :  { %2743 = dma.done.wait [#allocation6], 8192  }
  0x10   :  { %2744 = vsyncadd [#allocation6], 4294959104  ;;  %v2429_v0 = vld [vmem:[#allocation3 + $0x180] sm:$0xf]  ;;  %v2578_v2 = vld [vmem:[#allocation3 + $0x184] sm:$0xf] }
  0x11   :  { %v2586_v1 = vld [vmem:[#allocation3 + $0x1bc] sm:$0xf0]  ;;  %v2431_v4 = vld [vmem:[#allocation3 + $0x1c0] sm:$0xf0]  ;;  %v2579_v16 = vld [vmem:[#allocation3 + $0x18c] sm:$0xf] }
  0x12   :  { %v2430_v3 = vor.u32 %v2586_v1, %v2429_v0  ;;  %v2365_v5 = vld [vmem:[#allocation3 + $0x100] sm:$0xf]  ;;  %v2434_v7 = vor.u32 %v2578_v2, %v2431_v4  ;;  %v2562_v8 = vld [vmem:[#allocation3 + $0x104] sm:$0xf]  ;;  %v2439_v17 = vld [vmem:[#allocation3 + $0x1c8] sm:$0xf0] }
  0x13   :  { %v2570_v6 = vld [vmem:[#allocation3 + $0x13c] sm:$0xf0]  ;;  %v2367_v9 = vld [vmem:[#allocation3 + $0x140] sm:$0xf0]  ;;  %v2563_v18 = vld [vmem:[#allocation3 + $0x10c] sm:$0xf]  ;;  %v2442_v21 = vor.u32 %v2579_v16, %v2439_v17 }
  0x14   :  { %500 = vmatpush.bf16.msra.mxu0 %v2430_v3  ;;  %v2366_v10 = vor.u32 %v2570_v6, %v2365_v5  ;;  %514 = vmatpush.bf16.msra.mxu1 %v2434_v7  ;;  %v2370_v11 = vor.u32 %v2562_v8, %v2367_v9  ;;  %v2301_v12 = vld [vmem:[#allocation3 + $0x80] sm:$0xf]  ;;  %v2546_v14 = vld [vmem:[#allocation3 + $0x84] sm:$0xf]  ;;  %v2375_v19 = vld [vmem:[#allocation3 + $0x148] sm:$0xf0] }
  0x15   :  { %v2554_v13 = vld [vmem:[#allocation3 + $0xbc] sm:$0xf0]  ;;  %v2303_v15 = vld [vmem:[#allocation3 + $0xc0] sm:$0xf0]  ;;  %542 = vmatpush.bf16.msra.mxu3 %v2442_v21  ;;  %v2378_v27 = vor.u32 %v2563_v18, %v2375_v19  ;;  %v2437_v28 = vld [vmem:[#allocation3 + $0x188] sm:$0xf] }
  0x16   :  { %v2302_v20 = vor.u32 %v2554_v13, %v2301_v12  ;;  %v2306_v22 = vor.u32 %v2546_v14, %v2303_v15  ;;  %v2237_v23 = vld [vmem:[#allocation3] sm:$0xf]  ;;  %v2530_v25 = vld [vmem:[#allocation3 + $0x4] sm:$0xf]  ;;  %v2587_v29 = vld [vmem:[#allocation3 + $0x1c4] sm:$0xf0] }
  0x17   :  { %v2538_v24 = vld [vmem:[#allocation3 + $0x3c] sm:$0xf0]  ;;  %v2239_v26 = vld [vmem:[#allocation3 + $0x40] sm:$0xf0]  ;;  %v2547_v30 = vld [vmem:[#allocation3 + $0x8c] sm:$0xf]  ;;  %v2438_v37 = vor.u32 %v2587_v29, %v2437_v28 }
  0x18   :  { %501 = vmatpush.bf16.msra.mxu0 %v2366_v10  ;;  %515 = vmatpush.bf16.msra.mxu1 %v2370_v11  ;;  %v2311_v31 = vld [vmem:[#allocation3 + $0xc8] sm:$0xf0]  ;;  %v2238_v32 = vor.u32 %v2538_v24, %v2237_v23  ;;  %vm492_vm0 = vcmask 523264   ;;  %v2453_v33 = vld [vmem:[#allocation3 + $0x198] sm:$0xf]  ;;  %v2242_v35 = vor.u32 %v2530_v25, %v2239_v26  ;;  %s4138_s23 = sld [smem:[#allocation45_spill]] }
  0x19   :  { %v2589_v34 = vld [vmem:[#allocation3 + $0x1d4] sm:$0xf0]  ;;  %v2373_v38 = vld [vmem:[#allocation3 + $0x108] sm:$0xf]  ;;  %543 = vmatpush.bf16.msra.mxu3 %v2378_v27  ;;  %v2314_v42 = vor.u32 %v2547_v30, %v2311_v31  ;;  %v2531_v44 = vld [vmem:[#allocation3 + $0xc] sm:$0xf] }
  0x1a   :  { %v2454_v39 = vor.u32 %v2589_v34, %v2453_v33  ;;  %v2389_v40 = vld [vmem:[#allocation3 + $0x118] sm:$0xf]  ;;  %v2571_v43 = vld [vmem:[#allocation3 + $0x144] sm:$0xf0]  ;;  %v2247_v45 = vld [vmem:[#allocation3 + $0x48] sm:$0xf0] }
  0x1b   :  { %v2573_v41 = vld [vmem:[#allocation3 + $0x154] sm:$0xf0]  ;;  %v2581_v46 = vld [vmem:[#allocation3 + $0x19c] sm:$0xf]  ;;  %v2580_v48 = vld [vmem:[#allocation3 + $0x194] sm:$0xf]  ;;  %v2374_v54 = vor.u32 %v2571_v43, %v2373_v38  ;;  %v2250_v56 = vor.u32 %v2531_v44, %v2247_v45 }
  0x1c   :  { %502 = vmatpush.bf16.msra.mxu0 %v2302_v20  ;;  %516 = vmatpush.bf16.msra.mxu1 %v2306_v22  ;;  %v2390_v47 = vor.u32 %v2573_v41, %v2389_v40  ;;  %v2447_v49 = vld [vmem:[#allocation3 + $0x1d0] sm:$0xf0]  ;;  %v2455_v50 = vld [vmem:[#allocation3 + $0x1d8] sm:$0xf0]  ;;  %v2325_v52 = vld [vmem:[#allocation3 + $0x98] sm:$0xf] }
  0x1d   :  { %584 = vmatpush.bf16.msra.mxu2 %v2454_v39  ;;  %v2450_v51 = vor.u32 %v2580_v48, %v2447_v49  ;;  %v2557_v53 = vld [vmem:[#allocation3 + $0xd4] sm:$0xf0]  ;;  %v2309_v55 = vld [vmem:[#allocation3 + $0x88] sm:$0xf]  ;;  %544 = vmatpush.bf16.msra.mxu3 %v2314_v42  ;;  %v2564_v58 = vld [vmem:[#allocation3 + $0x114] sm:$0xf]  ;;  %v2458_v60 = vor.u32 %v2581_v46, %v2455_v50 }
  0x1e   :  { %v2850_v36 = vld [vmem:[%s4138_s23] sm:$0xff]  ;;  %v2555_v57 = vld [vmem:[#allocation3 + $0xc4] sm:$0xf0]  ;;  %v2383_v59 = vld [vmem:[#allocation3 + $0x150] sm:$0xf0]  ;;  %v2326_v63 = vor.u32 %v2557_v53, %v2325_v52 }
  0x1f   :  { %v2565_v61 = vld [vmem:[#allocation3 + $0x11c] sm:$0xf]  ;;  %v2386_v0 = vor.u32 %v2564_v58, %v2383_v59  ;;  %v2261_v1 = vld [vmem:[#allocation3 + $0x18] sm:$0xf]  ;;  %v2548_v3 = vld [vmem:[#allocation3 + $0x94] sm:$0xf]  ;;  %v2310_v4 = vor.u32 %v2555_v57, %v2309_v55 }
  0x20   :  { %503 = vmatpush.bf16.msra.mxu0 %v2238_v32  ;;  %517 = vmatpush.bf16.msra.mxu1 %v2242_v35  ;;  %v2391_v62 = vld [vmem:[#allocation3 + $0x158] sm:$0xf0]  ;;  %v2541_v2 = vld [vmem:[#allocation3 + $0x54] sm:$0xf0]  ;;  %v2319_v5 = vld [vmem:[#allocation3 + $0xd0] sm:$0xf0] }
  0x21   :  { %585 = vmatpush.bf16.msra.mxu2 %v2390_v47  ;;  %v2469_v6 = vld [vmem:[#allocation3 + $0x1a8] sm:$0xf]  ;;  %545 = vmatpush.bf16.msra.mxu3 %v2250_v56  ;;  %v2445_v10 = vld [vmem:[#allocation3 + $0x190] sm:$0xf]  ;;  %v2322_v11 = vor.u32 %v2548_v3, %v2319_v5  ;;  %v2394_v12 = vor.u32 %v2565_v61, %v2391_v62  ;;  %v2262_v14 = vor.u32 %v2541_v2, %v2261_v1  ;;  %v2532_v15 = vld [vmem:[#allocation3 + $0x14] sm:$0xf] }
  0x22   :  { %v2591_v7 = vld [vmem:[#allocation3 + $0x1e4] sm:$0xf0]  ;;  %v2588_v13 = vld [vmem:[#allocation3 + $0x1cc] sm:$0xf0]  ;;  %v2255_v16 = vld [vmem:[#allocation3 + $0x50] sm:$0xf0] }
  0x23   :  { %2491 = vmatmul.msk.bf16.vlgmr.msra.gmra.mxu0 %vm492_vm0, %v2850_v36  ;;  %2492 = vmatmul.msk.bf16.vlgmr.msra.gmra.mxu1 %vm492_vm0, %v2850_v36  ;;  %v2245_v8 = vld [vmem:[#allocation3 + $0x8] sm:$0xf]  ;;  %v2549_v17 = vld [vmem:[#allocation3 + $0x9c] sm:$0xf]  ;;  %v2470_v19 = vor.u32 %v2591_v7, %v2469_v6  ;;  %v2446_v23 = vor.u32 %v2588_v13, %v2445_v10  ;;  %v2258_v24 = vor.u32 %v2532_v15, %v2255_v16  ;;  %v2582_v25 = vld [vmem:[#allocation3 + $0x1a4] sm:$0xf] }
  0x24   :  { %528 = vmatpush.bf16.msrb.mxu0 %v2438_v37  ;;  %570 = vmatpush.bf16.msrb.mxu1 %v2450_v51  ;;  %v2539_v9 = vld [vmem:[#allocation3 + $0x44] sm:$0xf0]  ;;  %v2327_v18 = vld [vmem:[#allocation3 + $0xd8] sm:$0xf0]  ;;  %v2463_v26 = vld [vmem:[#allocation3 + $0x1e0] sm:$0xf0] }
  0x25   :  { %598 = vmatpush.bf16.msrb.mxu3 %v2458_v60  ;;  %586 = vmatpush.bf16.msra.mxu2 %v2326_v63  ;;  %v2246_v20 = vor.u32 %v2539_v9, %v2245_v8  ;;  %v2405_v21 = vld [vmem:[#allocation3 + $0x128] sm:$0xf]  ;;  %v2330_v27 = vor.u32 %v2549_v17, %v2327_v18  ;;  %v2381_v28 = vld [vmem:[#allocation3 + $0x110] sm:$0xf]  ;;  %v2533_v30 = vld [vmem:[#allocation3 + $0x1c] sm:$0xf]  ;;  %v2466_v33 = vor.u32 %v2582_v25, %v2463_v26 }
  0x26   :  { %2494 = vmatmul.msk.bf16.vlgmr.msra.gmra.mxu3 %vm492_vm0, %v2850_v36  ;;  %v2575_v22 = vld [vmem:[#allocation3 + $0x164] sm:$0xf0]  ;;  %v2572_v29 = vld [vmem:[#allocation3 + $0x14c] sm:$0xf0]  ;;  %v2263_v31 = vld [vmem:[#allocation3 + $0x58] sm:$0xf0] }
  0x27   :  { %v2406_v32 = vor.u32 %v2575_v22, %v2405_v21  ;;  %v2583_v34 = vld [vmem:[#allocation3 + $0x1ac] sm:$0xf]  ;;  %v2341_v37 = vld [vmem:[#allocation3 + $0xa8] sm:$0xf]  ;;  %v2382_v38 = vor.u32 %v2572_v29, %v2381_v28  ;;  %v2566_v40 = vld [vmem:[#allocation3 + $0x124] sm:$0xf]  ;;  %v2266_v42 = vor.u32 %v2533_v30, %v2263_v31 }
  0x28   :  { %529 = vmatpush.bf16.msrb.mxu0 %v2374_v54  ;;  %571 = vmatpush.bf16.msrb.mxu1 %v2386_v0  ;;  %v2471_v35 = vld [vmem:[#allocation3 + $0x1e8] sm:$0xf0]  ;;  %v2559_v39 = vld [vmem:[#allocation3 + $0xe4] sm:$0xf0]  ;;  %v2399_v41 = vld [vmem:[#allocation3 + $0x160] sm:$0xf0] }
  0x29   :  { %599 = vmatpush.bf16.msrb.mxu3 %v2394_v12  ;;  %587 = vmatpush.bf16.msra.mxu2 %v2262_v14  ;;  %v2317_v43 = vld [vmem:[#allocation3 + $0x90] sm:$0xf]  ;;  %v2474_v45 = vor.u32 %v2583_v34, %v2471_v35  ;;  %v2567_v47 = vld [vmem:[#allocation3 + $0x12c] sm:$0xf]  ;;  %v2342_v49 = vor.u32 %v2559_v39, %v2341_v37  ;;  %v2402_v50 = vor.u32 %v2566_v40, %v2399_v41  ;;  %v2277_v53 = vld [vmem:[#allocation3 + $0x28] sm:$0xf] }
  0x2a   :  { %v2556_v44 = vld [vmem:[#allocation3 + $0xcc] sm:$0xf0]  ;;  %v2407_v48 = vld [vmem:[#allocation3 + $0x168] sm:$0xf0]  ;;  %v2543_v54 = vld [vmem:[#allocation3 + $0x64] sm:$0xf0] }
  0x2b   :  { %v2253_v46 = vld [vmem:[#allocation3 + $0x10] sm:$0xf]  ;;  %v2318_v51 = vor.u32 %v2556_v44, %v2317_v43  ;;  %v2461_v55 = vld [vmem:[#allocation3 + $0x1a0] sm:$0xf]  ;;  %v2485_v56 = vld [vmem:[#allocation3 + $0x1b8] sm:$0xf]  ;;  %v2410_v58 = vor.u32 %v2567_v47, %v2407_v48  ;;  %v2278_v0 = vor.u32 %v2543_v54, %v2277_v53 }
  0x2c   :  { %530 = vmatpush.bf16.msrb.mxu0 %v2310_v4  ;;  %572 = vmatpush.bf16.msrb.mxu1 %v2322_v11  ;;  %v2540_v52 = vld [vmem:[#allocation3 + $0x4c] sm:$0xf0]  ;;  %v2593_v57 = vld [vmem:[#allocation3 + $0x1f4] sm:$0xf0]  ;;  %v2590_v59 = vld [vmem:[#allocation3 + $0x1dc] sm:$0xf0] }
  0x2d   :  { %640 = vmatpush.bf16.msrb.mxu2 %v2470_v19  ;;  %600 = vmatpush.bf16.msrb.mxu3 %v2330_v27  ;;  %v2550_v60 = vld [vmem:[#allocation3 + $0xa4] sm:$0xf]  ;;  %v2551_v62 = vld [vmem:[#allocation3 + $0xac] sm:$0xf]  ;;  %v2254_v1 = vor.u32 %v2540_v52, %v2253_v46  ;;  %v2486_v2 = vor.u32 %v2593_v57, %v2485_v56  ;;  %v2462_v3 = vor.u32 %v2590_v59, %v2461_v55  ;;  %v2397_v4 = vld [vmem:[#allocation3 + $0x120] sm:$0xf] }
  0x2e   :  { %2497 = vmatmul.msk.bf16.vlgmr.msra.gmra.mxu2 %vm492_vm0, %v2850_v36  ;;  %v2335_v61 = vld [vmem:[#allocation3 + $0xe0] sm:$0xf0]  ;;  %v2343_v63 = vld [vmem:[#allocation3 + $0xe8] sm:$0xf0]  ;;  %v2421_v6 = vld [vmem:[#allocation3 + $0x138] sm:$0xf] }
  0x2f   :  { %v2338_v5 = vor.u32 %v2550_v60, %v2335_v61  ;;  %v2577_v7 = vld [vmem:[#allocation3 + $0x174] sm:$0xf0]  ;;  %v2346_v8 = vor.u32 %v2551_v62, %v2343_v63  ;;  %v2574_v9 = vld [vmem:[#allocation3 + $0x15c] sm:$0xf0]  ;;  %v2534_v10 = vld [vmem:[#allocation3 + $0x24] sm:$0xf] }
  0x30   :  { %531 = vmatpush.bf16.msrb.mxu0 %v2246_v20  ;;  %573 = vmatpush.bf16.msrb.mxu1 %v2258_v24  ;;  %v2271_v11 = vld [vmem:[#allocation3 + $0x60] sm:$0xf0]  ;;  %v2535_v12 = vld [vmem:[#allocation3 + $0x2c] sm:$0xf]  ;;  %v2585_v14 = vld [vmem:[#allocation3 + $0x1bc] sm:$0xf]  ;;  %v2422_v16 = vor.u32 %v2577_v7, %v2421_v6  ;;  %v2398_v19 = vor.u32 %v2574_v9, %v2397_v4 }
  0x31   :  { %641 = vmatpush.bf16.msrb.mxu2 %v2406_v32  ;;  %601 = vmatpush.bf16.msrb.mxu3 %v2266_v42  ;;  %v2279_v13 = vld [vmem:[#allocation3 + $0x68] sm:$0xf0]  ;;  %v2487_v15 = vld [vmem:[#allocation3 + $0x1f8] sm:$0xf0]  ;;  %v2584_v17 = vld [vmem:[#allocation3 + $0x1b4] sm:$0xf]  ;;  %v2274_v20 = vor.u32 %v2534_v10, %v2271_v11 }
  0x32   :  { %v2479_v18 = vld [vmem:[#allocation3 + $0x1f0] sm:$0xf0]  ;;  %v2357_v21 = vld [vmem:[#allocation3 + $0xb8] sm:$0xf]  ;;  %v2490_v24 = vor.u32 %v2585_v14, %v2487_v15  ;;  %v2333_v25 = vld [vmem:[#allocation3 + $0xa0] sm:$0xf] }
  0x33   :  { %2493 = vmatmul.msk.bf16.vlgmr.msrb.gmra.mxu0 %vm492_vm0, %v2850_v36  ;;  %2496 = vmatmul.msk.bf16.vlgmr.msrb.gmra.mxu1 %vm492_vm0, %v2850_v36  ;;  %v2561_v22 = vld [vmem:[#allocation3 + $0xf4] sm:$0xf0]  ;;  %v2558_v26 = vld [vmem:[#allocation3 + $0xdc] sm:$0xf0]  ;;  %v2569_v27 = vld [vmem:[#allocation3 + $0x13c] sm:$0xf]  ;;  %v2482_v28 = vor.u32 %v2584_v17, %v2479_v18 }
  0x34   :  { %556 = vmatpush.bf16.msra.mxu0 %v2446_v23  ;;  %626 = vmatpush.bf16.msra.mxu1 %v2466_v33  ;;  %v2282_v23 = vor.u32 %v2535_v12, %v2279_v13  ;;  %v2423_v29 = vld [vmem:[#allocation3 + $0x178] sm:$0xf0]  ;;  %v2358_v30 = vor.u32 %v2561_v22, %v2357_v21  ;;  %v2568_v31 = vld [vmem:[#allocation3 + $0x134] sm:$0xf]  ;;  %v2293_v33 = vld [vmem:[#allocation3 + $0x38] sm:$0xf]  ;;  %v2334_v35 = vor.u32 %v2558_v26, %v2333_v25 }
  0x35   :  { %654 = vmatpush.bf16.msra.mxu3 %v2474_v45  ;;  %642 = vmatpush.bf16.msrb.mxu2 %v2342_v49  ;;  %v2415_v32 = vld [vmem:[#allocation3 + $0x170] sm:$0xf0]  ;;  %v2545_v34 = vld [vmem:[#allocation3 + $0x74] sm:$0xf0]  ;;  %v2426_v37 = vor.u32 %v2569_v27, %v2423_v29  ;;  %v2542_v39 = vld [vmem:[#allocation3 + $0x5c] sm:$0xf0] }
  0x36   :  { %2498 = vmatmul.msk.bf16.vlgmr.msrb.gmra.mxu3 %vm492_vm0, %v2850_v36  ;;  %v2477_v40 = vld [vmem:[#allocation3 + $0x1b0] sm:$0xf]  ;;  %v2418_v41 = vor.u32 %v2568_v31, %v2415_v32  ;;  %v2553_v43 = vld [vmem:[#allocation3 + $0xbc] sm:$0xf]  ;;  %v2294_v45 = vor.u32 %v2545_v34, %v2293_v33  ;;  %v2552_v48 = vld [vmem:[#allocation3 + $0xb4] sm:$0xf] }
  0x37   :  { %v2592_v42 = vld [vmem:[#allocation3 + $0x1ec] sm:$0xf0]  ;;  %v2359_v44 = vld [vmem:[#allocation3 + $0xf8] sm:$0xf0]  ;;  %v2351_v49 = vld [vmem:[#allocation3 + $0xf0] sm:$0xf0] }
  0x38   :  { %557 = vmatpush.bf16.msra.mxu0 %v2382_v38  ;;  %627 = vmatpush.bf16.msra.mxu1 %v2402_v50  ;;  %v2269_v38 = vld [vmem:[#allocation3 + $0x20] sm:$0xf]  ;;  %v2872_v47 = vld [vmem:[#allocation5 + $0x78] sm:$0xff]  ;;  %v2478_v50 = vor.u32 %v2592_v42, %v2477_v40  ;;  %v2413_v52 = vld [vmem:[#allocation3 + $0x130] sm:$0xf]  ;;  %v2354_v57 = vor.u32 %v2552_v48, %v2351_v49 }
  0x39   :  { %655 = vmatpush.bf16.msra.mxu3 %v2410_v58  ;;  %643 = vmatpush.bf16.msrb.mxu2 %v2278_v0  ;;  %v2270_v46 = vor.u32 %v2542_v39, %v2269_v38  ;;  %v2576_v53 = vld [vmem:[#allocation3 + $0x16c] sm:$0xf0]  ;;  %v2537_v54 = vld [vmem:[#allocation3 + $0x3c] sm:$0xf]  ;;  %v2536_v58 = vld [vmem:[#allocation3 + $0x34] sm:$0xf] }
  0x3a   :  { %v2295_v55 = vld [vmem:[#allocation3 + $0x78] sm:$0xf0]  ;;  %v2875_v56 = vld [vmem:[#allocation5 + $0x70] sm:$0xff]  ;;  %v2414_v60 = vor.u32 %v2576_v53, %v2413_v52  ;;  %v2877_v62 = vld [vmem:[#allocation5 + $0x68] sm:$0xff] }
  0x3b   :  { %4139 = vst [vmem:[#allocation10_spill] sm:$0xff] %v2875_v56  ;;  %v2287_v59 = vld [vmem:[#allocation3 + $0x70] sm:$0xf0]  ;;  %v2298_v61 = vor.u32 %v2537_v54, %v2295_v55  ;;  %v2349_v63 = vld [vmem:[#allocation3 + $0xb0] sm:$0xf]  ;;  %v2889_v6 = vld [vmem:[#allocation7 + $0xf8] sm:$0xff] }
  0x3c   :  { %558 = vmatpush.bf16.msra.mxu0 %v2318_v51  ;;  %628 = vmatpush.bf16.msra.mxu1 %v2338_v5  ;;  %v2362_v51 = vor.u32 %v2553_v43, %v2359_v44  ;;  %4140 = vst [vmem:[#allocation11_spill] sm:$0xff] %v2877_v62  ;;  %v2560_v0 = vld [vmem:[#allocation3 + $0xec] sm:$0xf0]  ;;  %v2893_v9 = vld [vmem:[#allocation5 + $0x58] sm:$0xff]  ;;  %v2895_v10 = vld [vmem:[#allocation5 + $0xe8] sm:$0xff] }
  0x3d   :  { %696 = vmatpush.bf16.msra.mxu2 %v2486_v2  ;;  %656 = vmatpush.bf16.msra.mxu3 %v2346_v8  ;;  %v2884_v2 = vld [vmem:[#allocation5 + $0x60] sm:$0xff]  ;;  %v2887_v4 = vld [vmem:[#allocation5 + $0xf0] sm:$0xff]  ;;  %v2350_v5 = vor.u32 %v2560_v0, %v2349_v63  ;;  %4143 = vst [vmem:[#allocation14_spill] sm:$0xff] %v2893_v9  ;;  %v2906_v15 = vld [vmem:[#allocation7 + $0xe8] sm:$0xff] }
  0x3e   :  { %2501 = vmatmul.msk.bf16.vlgmr.msrb.gmra.mxu2 %vm492_vm0, %v2850_v36  ;;  %4142 = vst [vmem:[#allocation13_spill] sm:$0xff] %v2887_v4  ;;  %v2285_v7 = vld [vmem:[#allocation3 + $0x30] sm:$0xf]  ;;  %v2903_v13 = vld [vmem:[#allocation5 + $0xe0] sm:$0xff]  ;;  %v2914_v17 = vld [vmem:[#allocation7 + $0x78] sm:$0xff] }
  0x3f   :  { %v2544_v8 = vld [vmem:[#allocation3 + $0x6c] sm:$0xf0]  ;;  %4146 = vst [vmem:[#allocation17_spill] sm:$0xff] %v2914_v17  ;;  %v2916_v18 = vld [vmem:[#allocation5 + $0xd8] sm:$0xff]  ;;  %v2936_v25 = vld [vmem:[#allocation7 + $0x68] sm:$0xff] }
  0x40   :  { %559 = vmatpush.bf16.msra.mxu0 %v2254_v1  ;;  %629 = vmatpush.bf16.msra.mxu1 %v2274_v20  ;;  %v2882_v1 = vld [vmem:[#allocation5 + $0xf8] sm:$0xff]  ;;  %v2897_v11 = vld [vmem:[#allocation7 + $0xf0] sm:$0xff]  ;;  %v2286_v14 = vor.u32 %v2544_v8, %v2285_v7  ;;  %4147 = vst [vmem:[#allocation18_spill] sm:$0xff] %v2916_v18  ;;  %v2923_v20 = vld [vmem:[#allocation5 + $0x40] sm:$0xff] }
  0x41   :  { %697 = vmatpush.bf16.msra.mxu2 %v2422_v16  ;;  %657 = vmatpush.bf16.msra.mxu3 %v2282_v23  ;;  %4141 = vst [vmem:[#allocation12_spill] sm:$0xff] %v2882_v1  ;;  %v2901_v12 = vld [vmem:[#allocation5 + $0x50] sm:$0xff]  ;;  %v2910_v16 = vld [vmem:[#allocation5 + $0x48] sm:$0xff]  ;;  %v2932_v23 = vld [vmem:[#allocation7 + $0xd8] sm:$0xff] }
  0x42   :  { %4144 = vst [vmem:[#allocation15_spill] sm:$0xff] %v2897_v11  ;;  %v2925_v21 = vld [vmem:[#allocation7 + $0x70] sm:$0xff]  ;;  %v2938_v26 = vld [vmem:[#allocation5 + $0xc8] sm:$0xff]  ;;  %v2948_v29 = vld [vmem:[#allocation7 + $0x60] sm:$0xff] }
  0x43   :  { %2495 = vmatmul.msk.bf16.vlgmr.msra.gmra.mxu0 %vm492_vm0, %v2850_v36  ;;  %2500 = vmatmul.msk.bf16.vlgmr.msra.gmra.mxu1 %vm492_vm0, %v2850_v36  ;;  %4145 = vst [vmem:[#allocation16_spill] sm:$0xff] %v2901_v12  ;;  %v2927_v22 = vld [vmem:[#allocation5 + $0xd0] sm:$0xff]  ;;  %v2956_v31 = vld [vmem:[#allocation7 + $0xc8] sm:$0xff]  ;;  %v2960_v33 = vld [vmem:[#allocation7 + $0x58] sm:$0xff] }
  0x44   :  { %612 = vmatpush.bf16.msrb.mxu0 %v2462_v3  ;;  %682 = vmatpush.bf16.msrb.mxu1 %v2482_v28  ;;  %v2290_v3 = vor.u32 %v2536_v58, %v2287_v59  ;;  %4148 = vst [vmem:[#allocation19_spill] sm:$0xff] %v2927_v22  ;;  %v2944_v27 = vld [vmem:[#allocation7 + $0xd0] sm:$0xff]  ;;  %v2958_v32 = vld [vmem:[#allocation5 + $0x28] sm:$0xff]  ;;  %v2962_v34 = vld [vmem:[#allocation5 + $0xb8] sm:$0xff] }
  0x45   :  { %710 = vmatpush.bf16.msrb.mxu3 %v2490_v24  ;;  %698 = vmatpush.bf16.msra.mxu2 %v2358_v30  ;;  %v2934_v24 = vld [vmem:[#allocation5 + $0x38] sm:$0xff]  ;;  %4150 = vst [vmem:[#allocation21_spill] sm:$0xff] %v2936_v25  ;;  %v2946_v28 = vld [vmem:[#allocation5 + $0x30] sm:$0xff]  ;;  %v2950_v30 = vld [vmem:[#allocation5 + $0xc0] sm:$0xff] }
  0x46   :  { %2502 = vmatmul.msk.bf16.vlgmr.msra.gmra.mxu3 %vm492_vm0, %v2850_v36  ;;  %4149 = vst [vmem:[#allocation20_spill] sm:$0xff] %v2934_v24  ;;  %v2972_v38 = vld [vmem:[#allocation7 + $0x50] sm:$0xff]  ;;  %v2980_v40 = vld [vmem:[#allocation7 + $0xb8] sm:$0xff]  ;;  %v2984_v42 = vld [vmem:[#allocation7 + $0x48] sm:$0xff] }
  0x47   :  { %4151 = vst [vmem:[#allocation22_spill] sm:$0xff] %v2938_v26  ;;  %v2974_v39 = vld [vmem:[#allocation5 + $0xb0] sm:$0xff]  ;;  %v2986_v43 = vld [vmem:[#allocation5 + $0xa8] sm:$0xff]  ;;  %v3004_v49 = vld [vmem:[#allocation7 + $0x38] sm:$0xff] }
  0x48   :  { %613 = vmatpush.bf16.msrb.mxu0 %v2398_v19  ;;  %683 = vmatpush.bf16.msrb.mxu1 %v2418_v41  ;;  %v2921_v19 = vld [vmem:[#allocation7 + $0xe0] sm:$0xff]  ;;  %4152 = vst [vmem:[#allocation23_spill] sm:$0xff] %v2944_v27  ;;  %v2982_v41 = vld [vmem:[#allocation5 + $0x18] sm:$0xff]  ;;  %v2992_v44 = vld [vmem:[#allocation7 + $0xb0] sm:$0xff] }
  0x49   :  { %711 = vmatpush.bf16.msrb.mxu3 %v2426_v37  ;;  %699 = vmatpush.bf16.msra.mxu2 %v2294_v45  ;;  %4153 = vst [vmem:[#allocation24_spill] sm:$0xff] %v2948_v29  ;;  %v2970_v37 = vld [vmem:[#allocation5 + $0x20] sm:$0xff]  ;;  %v3002_v48 = vld [vmem:[#allocation5 + $0x10] sm:$0xff]  ;;  %v3015_v52 = vld [vmem:[#allocation5 + $0x8] sm:$0xff] }
  0x4a   :  { %4154 = vst [vmem:[#allocation25_spill] sm:$0xff] %v2958_v32  ;;  %v2994_v45 = vld [vmem:[#allocation7 + $0x40] sm:$0xff]  ;;  %v3017_v53 = vld [vmem:[#allocation7 + $0x30] sm:$0xff]  ;;  %v3026_v55 = vld [vmem:[#allocation7 + $0x28] sm:$0xff] }
  0x4b   :  { %4155 = vst [vmem:[#allocation26_spill] sm:$0xff] %v2962_v34  ;;  %v3020_v54 = vld [vmem:[#allocation5 + $0x90] sm:$0xff]  ;;  %v3034_v58 = vld [vmem:[#allocation7 + $0xa0] sm:$0xff]  ;;  %v3050_v63 = vld [vmem:[#allocation7 + $0x18] sm:$0xff] }
  0x4c   :  { %614 = vmatpush.bf16.msrb.mxu0 %v2334_v35  ;;  %684 = vmatpush.bf16.msrb.mxu1 %v2354_v57  ;;  %v2968_v35 = vld [vmem:[#allocation7 + $0xc0] sm:$0xff]  ;;  %4156 = vst [vmem:[#allocation27_spill] sm:$0xff] %v3002_v48  ;;  %v3030_v57 = vld [vmem:[#allocation5 + $0x88] sm:$0xff]  ;;  %v3052_v0 = vld [vmem:[#allocation7 + $0x98] sm:$0xff] }
  0x4d   :  { %1020 = vmatpush.msrb.mxu2 %v2872_v47  ;;  %712 = vmatpush.bf16.msrb.mxu3 %v2362_v51  ;;  %v3013_v51 = vld [vmem:[#allocation7 + $0xa8] sm:$0xff]  ;;  %4158 = vst [vmem:[#allocation29_spill] sm:$0xff] %v3015_v52  ;;  %v3036_v59 = vld [vmem:[#allocation5] sm:$0xff] }
  0x4e   :  { %2505 = vmatmul.msk.bf16.vlgmr.msra.gmra.mxu2 %vm492_vm0, %v2850_v36  ;;  %4157 = vst [vmem:[#allocation28_spill] sm:$0xff] %v3013_v51  ;;  %v3068_v7 = vld [vmem:[#allocation7 + $0x88] sm:$0xff]  ;;  %v3074_v8 = vld [vmem:[#allocation7] sm:$0xff] }
  0x4f   :  { %1021 = vmatpush.msrb.mxu2 %v2875_v56  ;;  %4159 = vst [vmem:[#allocation30_spill] sm:$0xff] %v3020_v54 }
  0x50   :  { %615 = vmatpush.bf16.msrb.mxu0 %v2270_v46  ;;  %685 = vmatpush.bf16.msrb.mxu1 %v2290_v3  ;;  %v2996_v46 = vld [vmem:[#allocation5 + $0xa0] sm:$0xff]  ;;  %4160 = vst [vmem:[#allocation31_spill] sm:$0xff] %v3026_v55  ;;  %v3060_v3 = vld [vmem:[#allocation7 + $0x90] sm:$0xff] }
  0x51   :  { %1022 = vmatpush.msrb.mxu2 %v2877_v62  ;;  %713 = vmatpush.bf16.msrb.mxu3 %v2298_v61  ;;  %4161 = vst [vmem:[#allocation32_spill] sm:$0xff] %v3030_v57  ;;  %v3044_v61 = vld [vmem:[#allocation5 + $0x80] sm:$0xff] }
  0x52   :  { %4162 = vst [vmem:[#allocation33_spill] sm:$0xff] %v3034_v58 }
  0x53   :  { %1023 = vmatpush.msrb.mxu2 %v2884_v2  ;;  %2499 = vmatmul.msk.bf16.vlgmr.msrb.gmra.mxu0 %vm492_vm0, %v2850_v36  ;;  %4163 = vst [vmem:[#allocation34_spill] sm:$0xff] %v3036_v59 }
  0x54   :  { %668 = vmatpush.bf16.msra.mxu0 %v2478_v50  ;;  %1000 = vmatpush.msra.mxu1 %v2889_v6  ;;  %v3006_v50 = vld [vmem:[#allocation5 + $0x98] sm:$0xff]  ;;  %4165 = vst [vmem:[#allocation36_spill] sm:$0xff] %v3044_v61 }
  0x55   :  { %1040 = vmatpush.msra.mxu3 %v2882_v1  ;;  %1024 = vmatpush.msrb.mxu2 %v2893_v9  ;;  %4166 = vst [vmem:[#allocation37_spill] sm:$0xff] %v3050_v63 }
  0x56   :  { %1001 = vmatpush.msra.mxu1 %v2897_v11  ;;  %2506 = vmatmul.msk.bf16.vlgmr.msrb.gmra.mxu3 %vm492_vm0, %v2850_v36  ;;  %4167 = vst [vmem:[#allocation38_spill] sm:$0xff] %v3052_v0 }
  0x57   :  { %1041 = vmatpush.msra.mxu3 %v2887_v4  ;;  %1025 = vmatpush.msrb.mxu2 %v2901_v12  ;;  %4169 = vst [vmem:[#allocation40_spill] sm:$0xff] %v3060_v3 }
  0x58   :  { %669 = vmatpush.bf16.msra.mxu0 %v2414_v60  ;;  %1002 = vmatpush.msra.mxu1 %v2906_v15  ;;  %v3042_v60 = vld [vmem:[#allocation7 + $0x20] sm:$0xff]  ;;  %4171 = vst [vmem:[#allocation42_spill] sm:$0xff] %v3068_v7 }
  0x59   :  { %1042 = vmatpush.msra.mxu3 %v2895_v10  ;;  %1026 = vmatpush.msrb.mxu2 %v2910_v16  ;;  %4164 = vst [vmem:[#allocation35_spill] sm:$0xff] %v3042_v60 }
  0x5a   :  { %1003 = vmatpush.msra.mxu1 %v2921_v19  ;;  %4172 = vst [vmem:[#allocation43_spill] sm:$0xff] %v3074_v8 }
  0x5b   :  { %1043 = vmatpush.msra.mxu3 %v2903_v13  ;;  %1027 = vmatpush.msrb.mxu2 %v2923_v20 }
  0x5c   :  { %670 = vmatpush.bf16.msra.mxu0 %v2350_v5  ;;  %1004 = vmatpush.msra.mxu1 %v2932_v23  ;;  %v3066_v5 = vld [vmem:[#allocation7 + $0x8] sm:$0xff] }
  0x5d   :  { %1044 = vmatpush.msra.mxu3 %v2916_v18  ;;  %1028 = vmatpush.msrb.mxu2 %v2934_v24  ;;  %4170 = vst [vmem:[#allocation41_spill] sm:$0xff] %v3066_v5 }
  0x5e   :  { %1005 = vmatpush.msra.mxu1 %v2944_v27 }
  0x5f   :  { %1045 = vmatpush.msra.mxu3 %v2927_v22  ;;  %1029 = vmatpush.msrb.mxu2 %v2946_v28 }
  0x60   :  { %671 = vmatpush.bf16.msra.mxu0 %v2286_v14  ;;  %1006 = vmatpush.msra.mxu1 %v2956_v31  ;;  %v3076_v14 = vld [vmem:[#allocation7 + $0x80] sm:$0xff] }
  0x61   :  { %1046 = vmatpush.msra.mxu3 %v2938_v26  ;;  %1030 = vmatpush.msrb.mxu2 %v2958_v32  ;;  %4173 = vst [vmem:[#allocation44_spill] sm:$0xff] %v3076_v14 }
  0x62   :  { %1007 = vmatpush.msra.mxu1 %v2968_v35 }
  0x63   :  { %1047 = vmatpush.msra.mxu3 %v2950_v30  ;;  %1031 = vmatpush.msrb.mxu2 %v2970_v37 }
  0x64   :  { %980 = vmatpush.msrb.mxu0 %v2914_v17  ;;  %1008 = vmatpush.msra.mxu1 %v2980_v40 }
  0x65   :  { %1048 = vmatpush.msra.mxu3 %v2962_v34  ;;  %1032 = vmatpush.msrb.mxu2 %v2982_v41 }
  0x66   :  { %981 = vmatpush.msrb.mxu0 %v2925_v21  ;;  %1009 = vmatpush.msra.mxu1 %v2992_v44 }
  0x67   :  { %1049 = vmatpush.msra.mxu3 %v2974_v39  ;;  %1033 = vmatpush.msrb.mxu2 %v3002_v48 }
  0x68   :  { %982 = vmatpush.msrb.mxu0 %v2936_v25  ;;  %1010 = vmatpush.msra.mxu1 %v3013_v51 }
  0x69   :  { %1050 = vmatpush.msra.mxu3 %v2986_v43  ;;  %1034 = vmatpush.msrb.mxu2 %v3015_v52 }
  0x6a   :  { %983 = vmatpush.msrb.mxu0 %v2948_v29  ;;  %2504 = vmatmul.msk.bf16.vlgmr.msrb.gmra.mxu1 %vm492_vm0, %v2850_v36 }
  0x6b   :  { %1051 = vmatpush.msra.mxu3 %v2996_v46  ;;  %2503 = vmatmul.msk.bf16.vlgmr.msra.gmra.mxu0 %vm492_vm0, %v2850_v36  ;;  %v3058_v36 = vld [vmem:[#allocation7 + $0x10] sm:$0xff] }
  0x6c   :  { %984 = vmatpush.msrb.mxu0 %v2960_v33  ;;  %1011 = vmatpush.msra.mxu1 %v3034_v58  ;;  %4168 = vst [vmem:[#allocation39_spill] sm:$0xff] %v3058_v36 }
  0x6d   :  { %1052 = vmatpush.msra.mxu3 %v3006_v50  ;;  %1035 = vmatpush.msrb.mxu2 %v3036_v59 }
  0x6e   :  { %985 = vmatpush.msrb.mxu0 %v2972_v38  ;;  %1012 = vmatpush.msra.mxu1 %v3052_v0 }
  0x6f   :  { %1053 = vmatpush.msra.mxu3 %v3020_v54  ;;  %1101 = vmatpush.msra.mxu2 %v2872_v47 }
  0x70   :  { %986 = vmatpush.msrb.mxu0 %v2984_v42  ;;  %1013 = vmatpush.msra.mxu1 %v3060_v3 }
  0x71   :  { %1054 = vmatpush.msra.mxu3 %v3030_v57  ;;  %1102 = vmatpush.msra.mxu2 %v2875_v56 }
  0x72   :  { %987 = vmatpush.msrb.mxu0 %v2994_v45  ;;  %1014 = vmatpush.msra.mxu1 %v3068_v7 }
  0x73   :  { %1055 = vmatpush.msra.mxu3 %v3044_v61  ;;  %1103 = vmatpush.msra.mxu2 %v2877_v62 }
  0x74   :  { %988 = vmatpush.msrb.mxu0 %v3004_v49  ;;  %1015 = vmatpush.msra.mxu1 %v3076_v14 }
  0x75   :  { %1121 = vmatpush.msrb.mxu3 %v2882_v1  ;;  %1104 = vmatpush.msra.mxu2 %v2884_v2 }
  0x76   :  { %989 = vmatpush.msrb.mxu0 %v3017_v53  ;;  %1081 = vmatpush.msrb.mxu1 %v2889_v6 }
  0x77   :  { %1122 = vmatpush.msrb.mxu3 %v2887_v4  ;;  %1105 = vmatpush.msra.mxu2 %v2893_v9 }
  0x78   :  { %990 = vmatpush.msrb.mxu0 %v3026_v55  ;;  %1082 = vmatpush.msrb.mxu1 %v2897_v11 }
  0x79   :  { %1123 = vmatpush.msrb.mxu3 %v2895_v10  ;;  %1106 = vmatpush.msra.mxu2 %v2901_v12 }
  0x7a   :  { %991 = vmatpush.msrb.mxu0 %v3042_v60  ;;  %1083 = vmatpush.msrb.mxu1 %v2906_v15 }
  0x7b   :  { %1124 = vmatpush.msrb.mxu3 %v2903_v13  ;;  %1107 = vmatpush.msra.mxu2 %v2910_v16 }
  0x7c   :  { %992 = vmatpush.msrb.mxu0 %v3050_v63  ;;  %1084 = vmatpush.msrb.mxu1 %v2921_v19 }
  0x7d   :  { %1125 = vmatpush.msrb.mxu3 %v2916_v18  ;;  %1108 = vmatpush.msra.mxu2 %v2923_v20 }
  0x7e   :  { %993 = vmatpush.msrb.mxu0 %v3058_v36  ;;  %1085 = vmatpush.msrb.mxu1 %v2932_v23 }
  0x7f   :  { %1126 = vmatpush.msrb.mxu3 %v2927_v22  ;;  %1109 = vmatpush.msra.mxu2 %v2934_v24 }
  0x80   :  { %994 = vmatpush.msrb.mxu0 %v3066_v5  ;;  %1086 = vmatpush.msrb.mxu1 %v2944_v27 }
  0x81   :  { %1127 = vmatpush.msrb.mxu3 %v2938_v26  ;;  %1110 = vmatpush.msra.mxu2 %v2946_v28 }
  0x82   :  { %995 = vmatpush.msrb.mxu0 %v3074_v8  ;;  %1087 = vmatpush.msrb.mxu1 %v2956_v31 }
  0x83   :  { %1128 = vmatpush.msrb.mxu3 %v2950_v30  ;;  %1111 = vmatpush.msra.mxu2 %v2958_v32 }
  0x84   :  { %1061 = vmatpush.msra.mxu0 %v2914_v17  ;;  %1088 = vmatpush.msrb.mxu1 %v2968_v35 }
  0x85   :  { %1129 = vmatpush.msrb.mxu3 %v2962_v34  ;;  %1112 = vmatpush.msra.mxu2 %v2970_v37 }
  0x86   :  { %1062 = vmatpush.msra.mxu0 %v2925_v21  ;;  %1089 = vmatpush.msrb.mxu1 %v2980_v40 }
  0x87   :  { %1130 = vmatpush.msrb.mxu3 %v2974_v39  ;;  %1113 = vmatpush.msra.mxu2 %v2982_v41 }
  0x88   :  { %1063 = vmatpush.msra.mxu0 %v2936_v25  ;;  %1090 = vmatpush.msrb.mxu1 %v2992_v44 }
  0x89   :  { %1131 = vmatpush.msrb.mxu3 %v2986_v43  ;;  %1114 = vmatpush.msra.mxu2 %v3002_v48 }
  0x8a   :  { %1064 = vmatpush.msra.mxu0 %v2948_v29  ;;  %1091 = vmatpush.msrb.mxu1 %v3013_v51 }
  0x8b   :  { %1132 = vmatpush.msrb.mxu3 %v2996_v46  ;;  %1115 = vmatpush.msra.mxu2 %v3015_v52 }
  0x8c   :  { %1065 = vmatpush.msra.mxu0 %v2960_v33  ;;  %1092 = vmatpush.msrb.mxu1 %v3034_v58 }
  0x8d   :  { %1133 = vmatpush.msrb.mxu3 %v3006_v50  ;;  %1116 = vmatpush.msra.mxu2 %v3036_v59 }
  0x8e   :  { %1066 = vmatpush.msra.mxu0 %v2972_v38  ;;  %1093 = vmatpush.msrb.mxu1 %v3052_v0 }
  0x8f   :  { %1134 = vmatpush.msrb.mxu3 %v3020_v54 }
  0x90   :  { %1067 = vmatpush.msra.mxu0 %v2984_v42  ;;  %1094 = vmatpush.msrb.mxu1 %v3060_v3 }
  0x91   :  { %1135 = vmatpush.msrb.mxu3 %v3030_v57 }
  0x92   :  { %1068 = vmatpush.msra.mxu0 %v2994_v45  ;;  %1095 = vmatpush.msrb.mxu1 %v3068_v7 }
  0x93   :  { %1136 = vmatpush.msrb.mxu3 %v3044_v61  ;;  %v3143_v61 = vld [vmem:[%s4035_s2] sm:$0xff] }
  0x94   :  { %1069 = vmatpush.msra.mxu0 %v3004_v49  ;;  %1096 = vmatpush.msrb.mxu1 %v3076_v14  ;;  %v820_v0 = vperm.slane %v3143_v61, 0  ;;  %v821_v3 = vperm.slane %v3143_v61, 1 }
  0x96   :  { %1070 = vmatpush.msra.mxu0 %v3017_v53 }
  0x98   :  { %1071 = vmatpush.msra.mxu0 %v3026_v55 }
  0x9a   :  { %1072 = vmatpush.msra.mxu0 %v3042_v60 }
  0x9c   :  { %1073 = vmatpush.msra.mxu0 %v3050_v63 }
  0x9e   :  { %1074 = vmatpush.msra.mxu0 %v3058_v36 }
  0xa0   :  { %1075 = vmatpush.msra.mxu0 %v3066_v5  ;;  %v505_v63 = vpop.f32.mrf.mxu0  ;;  %v519_v59 = vpop.f32.mrf.mxu1 }
  0xa1   :  { %vm720_vm1 = vcmp.ge.f32.partialorder %v505_v63, 0.0  ;;  %v752_v36 = vmul.f32 0.01, %v505_v63  ;;  %vm721_vm2 = vcmp.ge.f32.partialorder %v519_v59, 0.0  ;;  %v753_v5 = vmul.f32 0.01, %v519_v59 }
  0xa2   :  { %1076 = vmatpush.msra.mxu0 %v3074_v8 }
  0xa3   :  { %v784_v7 = vsel %vm720_vm1, %v505_v63, %v752_v36  ;;  %v785_v8 = vsel %vm721_vm2, %v519_v59, %v753_v5 }
  0xa4   :  { %v852_v58 = vadd.f32 %v820_v0, %v784_v7  ;;  %v853_v60 = vadd.f32 %v821_v3, %v785_v8  ;;  %v823_v7 = vperm.slane %v3143_v61, 3 }
  0xa6   :  { %v884_v14 = vmax.f32 %v852_v58, 0.0  ;;  %v885_v57 = vmax.f32 %v853_v60, 0.0 }
  0xa8   :  { %v507_v52 = vpop.f32.mrf.mxu0  ;;  %1036 = vmatmul.f32.vlgmr.msrb.gmra.mxu2 %v884_v14  ;;  %v521_v55 = vpop.f32.mrf.mxu1  ;;  %1056 = vmatmul.f32.vlgmr.msra.gmra.mxu3 %v885_v57 }
  0xa9   :  { %vm736_vm3 = vcmp.ge.f32.partialorder %v507_v52, 0.0  ;;  %v768_v51 = vmul.f32 0.01, %v507_v52  ;;  %1182 = vmatpush.msrb.mxu2 %v2872_v47  ;;  %vm737_vm4 = vcmp.ge.f32.partialorder %v521_v55, 0.0  ;;  %v769_v54 = vmul.f32 0.01, %v521_v55  ;;  %1202 = vmatpush.msra.mxu3 %v2882_v1  ;;  %v547_v60 = vpop.f32.mrf.mxu3 }
  0xaa   :  { %vm723_vm6 = vcmp.ge.f32.partialorder %v547_v60, 0.0 }
  0xab   :  { %v800_v48 = vsel %vm736_vm3, %v507_v52, %v768_v51  ;;  %1183 = vmatpush.msrb.mxu2 %v2875_v56  ;;  %v801_v59 = vsel %vm737_vm4, %v521_v55, %v769_v54  ;;  %1203 = vmatpush.msra.mxu3 %v2887_v4  ;;  %v822_v52 = vperm.slane %v3143_v61, 2  ;;  %v755_v54 = vmul.f32 0.01, %v547_v60 }
  0xac   :  { %v868_v63 = vadd.f32 %v820_v0, %v800_v48  ;;  %v869_v58 = vadd.f32 %v821_v3, %v801_v59 }
  0xad   :  { %1184 = vmatpush.msrb.mxu2 %v2877_v62  ;;  %1204 = vmatpush.msra.mxu3 %v2895_v10 }
  0xae   :  { %v900_v36 = vmax.f32 %v868_v63, 0.0  ;;  %v901_v57 = vmax.f32 %v869_v58, 0.0  ;;  %v787_v63 = vsel %vm723_vm6, %v547_v60, %v755_v54 }
  0xaf   :  { %1185 = vmatpush.msrb.mxu2 %v2884_v2  ;;  %1205 = vmatpush.msra.mxu3 %v2903_v13  ;;  %v855_v58 = vadd.f32 %v823_v7, %v787_v63  ;;  %v4181_v63 = vld [vmem:[#allocation33_spill] sm:$0xff] }
  0xb0   :  { %996 = vmatmul.f32.vlgmr.msrb.gmra.mxu0 %v900_v36  ;;  %v533_v51 = vpop.f32.mrf.mxu0  ;;  %1016 = vmatmul.f32.vlgmr.msra.gmra.mxu1 %v901_v57 }
  0xb1   :  { %1142 = vmatpush.msrb.mxu0 %v2914_v17  ;;  %1162 = vmatpush.msra.mxu1 %v2889_v6  ;;  %v754_v48 = vmul.f32 0.01, %v533_v51  ;;  %vm722_vm5 = vcmp.ge.f32.partialorder %v533_v51, 0.0  ;;  %v549_v55 = vpop.f32.mrf.mxu3 }
  0xb2   :  { %1186 = vmatpush.msrb.mxu2 %v2893_v9  ;;  %1206 = vmatpush.msra.mxu3 %v2916_v18  ;;  %v771_v8 = vmul.f32 0.01, %v549_v55  ;;  %vm739_vm8 = vcmp.ge.f32.partialorder %v549_v55, 0.0 }
  0xb3   :  { %1143 = vmatpush.msrb.mxu0 %v2925_v21  ;;  %1163 = vmatpush.msra.mxu1 %v2897_v11  ;;  %v786_v0 = vsel %vm722_vm5, %v533_v51, %v754_v48  ;;  %v887_v48 = vmax.f32 %v855_v58, 0.0  ;;  %v4183_v58 = vld [vmem:[#allocation36_spill] sm:$0xff] }
  0xb4   :  { %1187 = vmatpush.msrb.mxu2 %v2901_v12  ;;  %1207 = vmatpush.msra.mxu3 %v2927_v22  ;;  %v854_v14 = vadd.f32 %v822_v52, %v786_v0  ;;  %v803_v60 = vsel %vm739_vm8, %v549_v55, %v771_v8  ;;  %v4174_v55 = vld [vmem:[#allocation27_spill] sm:$0xff]  ;;  %v4175_v0 = vld [vmem:[#allocation30_spill] sm:$0xff]  ;;  %v4179_v8 = vld [vmem:[#allocation32_spill] sm:$0xff] }
  0xb5   :  { %1144 = vmatpush.msrb.mxu0 %v2936_v25  ;;  %1164 = vmatpush.msra.mxu1 %v2906_v15  ;;  %v871_v51 = vadd.f32 %v823_v7, %v803_v60  ;;  %v4178_v7 = vld [vmem:[#allocation29_spill] sm:$0xff] }
  0xb6   :  { %1188 = vmatpush.msrb.mxu2 %v2910_v16  ;;  %1208 = vmatpush.msra.mxu3 %v2938_v26  ;;  %v886_v36 = vmax.f32 %v854_v14, 0.0  ;;  %v4180_v14 = vld [vmem:[#allocation35_spill] sm:$0xff]  ;;  %v4184_v60 = vld [vmem:[#allocation37_spill] sm:$0xff] }
  0xb7   :  { %1145 = vmatpush.msrb.mxu0 %v2948_v29  ;;  %1165 = vmatpush.msra.mxu1 %v2921_v19 }
  0xb8   :  { %1189 = vmatpush.msrb.mxu2 %v2923_v20  ;;  %v535_v3 = vpop.f32.mrf.mxu0  ;;  %1209 = vmatpush.msra.mxu3 %v2950_v30 }
  0xb9   :  { %1146 = vmatpush.msrb.mxu0 %v2960_v33  ;;  %v770_v5 = vmul.f32 0.01, %v535_v3  ;;  %1166 = vmatpush.msra.mxu1 %v2932_v23  ;;  %vm738_vm7 = vcmp.ge.f32.partialorder %v535_v3, 0.0 }
  0xba   :  { %1190 = vmatpush.msrb.mxu2 %v2934_v24  ;;  %1210 = vmatpush.msra.mxu3 %v2962_v34 }
  0xbb   :  { %1147 = vmatpush.msrb.mxu0 %v2972_v38  ;;  %1167 = vmatpush.msra.mxu1 %v2944_v27  ;;  %v802_v59 = vsel %vm738_vm7, %v535_v3, %v770_v5  ;;  %v4176_v3 = vld [vmem:[#allocation31_spill] sm:$0xff]  ;;  %v4177_v5 = vld [vmem:[#allocation28_spill] sm:$0xff] }
  0xbc   :  { %1191 = vmatpush.msrb.mxu2 %v2946_v28  ;;  %1211 = vmatpush.msra.mxu3 %v2974_v39  ;;  %v870_v57 = vadd.f32 %v822_v52, %v802_v59  ;;  %v903_v52 = vmax.f32 %v871_v51, 0.0  ;;  %v4182_v59 = vld [vmem:[#allocation34_spill] sm:$0xff] }
  0xbd   :  { %1148 = vmatpush.msrb.mxu0 %v2984_v42  ;;  %1168 = vmatpush.msra.mxu1 %v2956_v31 }
  0xbe   :  { %1192 = vmatpush.msrb.mxu2 %v2958_v32  ;;  %1212 = vmatpush.msra.mxu3 %v2986_v43  ;;  %v902_v54 = vmax.f32 %v870_v57, 0.0  ;;  %v4186_v57 = vld [vmem:[#allocation39_spill] sm:$0xff] }
  0xbf   :  { %1149 = vmatpush.msrb.mxu0 %v2994_v45  ;;  %1169 = vmatpush.msra.mxu1 %v2968_v35 }
  0xc0   :  { %1193 = vmatpush.msrb.mxu2 %v2970_v37  ;;  %1213 = vmatpush.msra.mxu3 %v2996_v46  ;;  %v561_v51 = vpop.f32.mrf.mxu0 }
  0xc1   :  { %1150 = vmatpush.msrb.mxu0 %v3004_v49  ;;  %1170 = vmatpush.msra.mxu1 %v2980_v40  ;;  %vm724_vm9 = vcmp.ge.f32.partialorder %v561_v51, 0.0 }
  0xc2   :  { %1194 = vmatpush.msrb.mxu2 %v2982_v41  ;;  %1214 = vmatpush.msra.mxu3 %v3006_v50 }
  0xc3   :  { %1117 = vmatmul.f32.vlgmr.msra.gmra.mxu2 %v886_v36  ;;  %1151 = vmatpush.msrb.mxu0 %v3017_v53  ;;  %v4185_v36 = vld [vmem:[#allocation38_spill] sm:$0xff] }
  0xc4   :  { %1171 = vmatpush.msra.mxu1 %v2992_v44  ;;  %1195 = vmatpush.msrb.mxu2 %v4174_v55 }
  0xc5   :  { %1215 = vmatpush.msra.mxu3 %v4175_v0  ;;  %1152 = vmatpush.msrb.mxu0 %v4176_v3 }
  0xc6   :  { %1137 = vmatmul.f32.vlgmr.msrb.gmra.mxu3 %v887_v48  ;;  %1172 = vmatpush.msra.mxu1 %v4177_v5  ;;  %v4187_v48 = vld [vmem:[#allocation40_spill] sm:$0xff] }
  0xc7   :  { %1196 = vmatpush.msrb.mxu2 %v4178_v7  ;;  %1216 = vmatpush.msra.mxu3 %v4179_v8 }
  0xc8   :  { %1077 = vmatmul.f32.vlgmr.msra.gmra.mxu0 %v902_v54  ;;  %1097 = vmatmul.f32.vlgmr.msrb.gmra.mxu1 %v903_v52  ;;  %v575_v54 = vpop.f32.mrf.mxu1  ;;  %v4188_v52 = vld [vmem:[#allocation41_spill] sm:$0xff] }
  0xc9   :  { %1153 = vmatpush.msrb.mxu0 %v4180_v14  ;;  %1173 = vmatpush.msra.mxu1 %v4181_v63  ;;  %vm725_vm10 = vcmp.ge.f32.partialorder %v575_v54, 0.0 }
  0xca   :  { %1197 = vmatpush.msrb.mxu2 %v4182_v59  ;;  %1217 = vmatpush.msra.mxu3 %v4183_v58 }
  0xcb   :  { %1154 = vmatpush.msrb.mxu0 %v4184_v60  ;;  %1174 = vmatpush.msra.mxu1 %v4185_v36 }
  0xcc   :  { %1263 = vmatpush.msra.mxu2 %v2872_v47  ;;  %1283 = vmatpush.msrb.mxu3 %v2882_v1  ;;  %v4189_v1 = vld [vmem:[#allocation42_spill] sm:$0xff] }
  0xcd   :  { %1155 = vmatpush.msrb.mxu0 %v4186_v57  ;;  %1175 = vmatpush.msra.mxu1 %v4187_v48 }
  0xce   :  { %1264 = vmatpush.msra.mxu2 %v2875_v56  ;;  %1284 = vmatpush.msrb.mxu3 %v2887_v4  ;;  %v4190_v56 = vld [vmem:[#allocation43_spill] sm:$0xff]  ;;  %v4191_v4 = vld [vmem:[#allocation44_spill] sm:$0xff] }
  0xcf   :  { %1156 = vmatpush.msrb.mxu0 %v4188_v52  ;;  %1176 = vmatpush.msra.mxu1 %v4189_v1 }
  0xd0   :  { %1265 = vmatpush.msra.mxu2 %v2877_v62  ;;  %1285 = vmatpush.msrb.mxu3 %v2895_v10  ;;  %v756_v62 = vmul.f32 0.01, %v561_v51 }
  0xd1   :  { %1157 = vmatpush.msrb.mxu0 %v4190_v56  ;;  %1177 = vmatpush.msra.mxu1 %v4191_v4  ;;  %v757_v4 = vmul.f32 0.01, %v575_v54 }
  0xd2   :  { %1266 = vmatpush.msra.mxu2 %v2884_v2  ;;  %1286 = vmatpush.msrb.mxu3 %v2903_v13 }
  0xd3   :  { %1223 = vmatpush.msra.mxu0 %v2914_v17  ;;  %1243 = vmatpush.msrb.mxu1 %v2889_v6  ;;  %v824_v17 = vperm.slane %v3143_v61, 4 }
  0xd4   :  { %1267 = vmatpush.msra.mxu2 %v2893_v9  ;;  %1287 = vmatpush.msrb.mxu3 %v2916_v18  ;;  %v788_v9 = vsel %vm724_vm9, %v561_v51, %v756_v62  ;;  %v563_v18 = vpop.f32.mrf.mxu0  ;;  %v589_v51 = vpop.f32.mrf.mxu2 }
  0xd5   :  { %1224 = vmatpush.msra.mxu0 %v2925_v21  ;;  %1244 = vmatpush.msrb.mxu1 %v2897_v11  ;;  %v577_v11 = vpop.f32.mrf.mxu1  ;;  %v772_v62 = vmul.f32 0.01, %v563_v18  ;;  %vm740_vm11 = vcmp.ge.f32.partialorder %v563_v18, 0.0  ;;  %vm726_vm13 = vcmp.ge.f32.partialorder %v589_v51, 0.0 }
  0xd6   :  { %1268 = vmatpush.msra.mxu2 %v2901_v12  ;;  %1288 = vmatpush.msrb.mxu3 %v2927_v22  ;;  %v825_v12 = vperm.slane %v3143_v61, 5  ;;  %v789_v22 = vsel %vm725_vm10, %v575_v54, %v757_v4  ;;  %vm741_vm12 = vcmp.ge.f32.partialorder %v577_v11, 0.0 }
  0xd7   :  { %1225 = vmatpush.msra.mxu0 %v2936_v25  ;;  %1245 = vmatpush.msrb.mxu1 %v2906_v15  ;;  %v856_v25 = vadd.f32 %v824_v17, %v788_v9  ;;  %v804_v54 = vsel %vm740_vm11, %v563_v18, %v772_v62 }
  0xd8   :  { %1269 = vmatpush.msra.mxu2 %v2910_v16  ;;  %1289 = vmatpush.msrb.mxu3 %v2938_v26  ;;  %v603_v26 = vpop.f32.mrf.mxu3  ;;  %v857_v9 = vadd.f32 %v825_v12, %v789_v22 }
  0xd9   :  { %1226 = vmatpush.msra.mxu0 %v2948_v29  ;;  %1246 = vmatpush.msrb.mxu1 %v2921_v19  ;;  %v773_v29 = vmul.f32 0.01, %v577_v11  ;;  %v888_v4 = vmax.f32 %v856_v25, 0.0  ;;  %v826_v25 = vperm.slane %v3143_v61, 6  ;;  %v759_v18 = vmul.f32 0.01, %v603_v26 }
  0xda   :  { %1270 = vmatpush.msra.mxu2 %v2923_v20  ;;  %1290 = vmatpush.msrb.mxu3 %v2950_v30  ;;  %v889_v22 = vmax.f32 %v857_v9, 0.0  ;;  %vm727_vm14 = vcmp.ge.f32.partialorder %v603_v26, 0.0 }
  0xdb   :  { %1227 = vmatpush.msra.mxu0 %v2960_v33  ;;  %1247 = vmatpush.msrb.mxu1 %v2932_v23 }
  0xdc   :  { %1271 = vmatpush.msra.mxu2 %v2934_v24  ;;  %1291 = vmatpush.msrb.mxu3 %v2962_v34  ;;  %v758_v24 = vmul.f32 0.01, %v589_v51  ;;  %v805_v34 = vsel %vm741_vm12, %v577_v11, %v773_v29  ;;  %v827_v11 = vperm.slane %v3143_v61, 7  ;;  %v591_v29 = vpop.f32.mrf.mxu2 }
  0xdd   :  { %1228 = vmatpush.msra.mxu0 %v2972_v38  ;;  %1248 = vmatpush.msrb.mxu1 %v2944_v27  ;;  %v872_v27 = vadd.f32 %v824_v17, %v804_v54  ;;  %v873_v62 = vadd.f32 %v825_v12, %v805_v34  ;;  %v791_v34 = vsel %vm727_vm14, %v603_v26, %v759_v18  ;;  %vm742_vm15 = vcmp.ge.f32.partialorder %v591_v29, 0.0 }
  0xde   :  { %1272 = vmatpush.msra.mxu2 %v2946_v28  ;;  %1292 = vmatpush.msrb.mxu3 %v2974_v39 }
  0xdf   :  { %1229 = vmatpush.msra.mxu0 %v2984_v42  ;;  %1249 = vmatpush.msrb.mxu1 %v2956_v31  ;;  %v904_v17 = vmax.f32 %v872_v27, 0.0  ;;  %v905_v9 = vmax.f32 %v873_v62, 0.0  ;;  %v859_v27 = vadd.f32 %v827_v11, %v791_v34  ;;  %v4193_v62 = vld [vmem:[#allocation10_spill] sm:$0xff]  ;;  %v4197_v34 = vld [vmem:[#allocation17_spill] sm:$0xff] }
  0xe0   :  { %1273 = vmatpush.msra.mxu2 %v2958_v32  ;;  %1293 = vmatpush.msrb.mxu3 %v2986_v43  ;;  %v790_v32 = vsel %vm726_vm13, %v589_v51, %v758_v24  ;;  %v605_v24 = vpop.f32.mrf.mxu3  ;;  %v774_v51 = vmul.f32 0.01, %v591_v29 }
  0xe1   :  { %1230 = vmatpush.msra.mxu0 %v2994_v45  ;;  %1250 = vmatpush.msrb.mxu1 %v2968_v35  ;;  %v858_v12 = vadd.f32 %v826_v25, %v790_v32  ;;  %v775_v61 = vmul.f32 0.01, %v605_v24  ;;  %vm743_vm1 = vcmp.ge.f32.partialorder %v605_v24, 0.0 }
  0xe2   :  { %1274 = vmatpush.msra.mxu2 %v2970_v37  ;;  %1294 = vmatpush.msrb.mxu3 %v2996_v46  ;;  %v806_v32 = vsel %vm742_vm15, %v591_v29, %v774_v51  ;;  %v4203_v51 = vld [vmem:[#allocation21_spill] sm:$0xff] }
  0xe3   :  { %1198 = vmatmul.f32.vlgmr.msrb.gmra.mxu2 %v888_v4  ;;  %1231 = vmatpush.msra.mxu0 %v3004_v49  ;;  %v890_v26 = vmax.f32 %v858_v12, 0.0  ;;  %v891_v4 = vmax.f32 %v859_v27, 0.0  ;;  %v807_v54 = vsel %vm743_vm1, %v605_v24, %v775_v61  ;;  %v874_v18 = vadd.f32 %v826_v25, %v806_v32  ;;  %v4201_v24 = vld [vmem:[#allocation16_spill] sm:$0xff]  ;;  %v4204_v27 = vld [vmem:[#allocation22_spill] sm:$0xff]  ;;  %v617_v61 = vpop.f32.mrf.mxu0 }
  0xe4   :  { %1251 = vmatpush.msrb.mxu1 %v2980_v40  ;;  %1275 = vmatpush.msra.mxu2 %v2982_v41  ;;  %v875_v12 = vadd.f32 %v827_v11, %v807_v54  ;;  %v4196_v11 = vld [vmem:[#allocation44_spill] sm:$0xff]  ;;  %vm728_vm2 = vcmp.ge.f32.partialorder %v617_v61, 0.0 }
  0xe5   :  { %1295 = vmatpush.msrb.mxu3 %v3006_v50  ;;  %1232 = vmatpush.msra.mxu0 %v3017_v53  ;;  %v906_v29 = vmax.f32 %v874_v18, 0.0  ;;  %v3406_v18 = vld [vmem:[#allocation5 + $0x50] sm:$0xff] }
  0xe6   :  { %1218 = vmatmul.f32.vlgmr.msra.gmra.mxu3 %v889_v22  ;;  %1252 = vmatpush.msrb.mxu1 %v2992_v44  ;;  %v4192_v22 = vld [vmem:[#allocation12_spill] sm:$0xff]  ;;  %v907_v25 = vmax.f32 %v875_v12, 0.0 }
  0xe7   :  { %1276 = vmatpush.msra.mxu2 %v4174_v55  ;;  %1296 = vmatpush.msrb.mxu3 %v4175_v0 }
  0xe8   :  { %1233 = vmatpush.msra.mxu0 %v4176_v3  ;;  %1253 = vmatpush.msrb.mxu1 %v4177_v5 }
  0xe9   :  { %1277 = vmatpush.msra.mxu2 %v4178_v7  ;;  %1297 = vmatpush.msrb.mxu3 %v4179_v8 }
  0xea   :  { %1158 = vmatmul.f32.vlgmr.msrb.gmra.mxu0 %v904_v17  ;;  %1178 = vmatmul.f32.vlgmr.msra.gmra.mxu1 %v905_v9  ;;  %v4194_v17 = vld [vmem:[#allocation13_spill] sm:$0xff]  ;;  %v4199_v9 = vld [vmem:[#allocation18_spill] sm:$0xff] }
  0xeb   :  { %1234 = vmatpush.msra.mxu0 %v4180_v14  ;;  %1254 = vmatpush.msrb.mxu1 %v4181_v63 }
  0xec   :  { %1278 = vmatpush.msra.mxu2 %v4182_v59  ;;  %1298 = vmatpush.msrb.mxu3 %v4183_v58 }
  0xed   :  { %1235 = vmatpush.msra.mxu0 %v4184_v60  ;;  %1255 = vmatpush.msrb.mxu1 %v4185_v36 }
  0xee   :  { %1344 = vmatpush.msrb.mxu2 %v2872_v47  ;;  %1364 = vmatpush.msra.mxu3 %v4192_v22  ;;  %v4195_v47 = vld [vmem:[#allocation11_spill] sm:$0xff]  ;;  %v3403_v22 = vld [vmem:[#allocation7 + $0xf0] sm:$0xff] }
  0xef   :  { %1279 = vmatmul.f32.vlgmr.msra.gmra.mxu2 %v890_v26  ;;  %1236 = vmatpush.msra.mxu0 %v4186_v57  ;;  %v4206_v26 = vld [vmem:[#allocation20_spill] sm:$0xff] }
  0xf0   :  { %1345 = vmatpush.msrb.mxu2 %v4193_v62  ;;  %1365 = vmatpush.msra.mxu3 %v4194_v17  ;;  %v3409_v62 = vld [vmem:[#allocation5 + $0xd0] sm:$0xff]  ;;  %v3412_v17 = vld [vmem:[#allocation7 + $0x68] sm:$0xff] }
  0xf1   :  { %1256 = vmatpush.msrb.mxu1 %v4187_v48  ;;  %1299 = vmatmul.f32.vlgmr.msrb.gmra.mxu3 %v891_v4  ;;  %v3398_v4 = vld [vmem:[#allocation7 + $0x70] sm:$0xff] }
  0xf2   :  { %1346 = vmatpush.msrb.mxu2 %v4195_v47  ;;  %1366 = vmatpush.msra.mxu3 %v2895_v10  ;;  %v4198_v10 = vld [vmem:[#allocation14_spill] sm:$0xff]  ;;  %v3417_v47 = vld [vmem:[#allocation7 + $0xe8] sm:$0xff] }
  0xf3   :  { %1237 = vmatpush.msra.mxu0 %v4188_v52  ;;  %1257 = vmatpush.msrb.mxu1 %v4189_v1 }
  0xf4   :  { %1347 = vmatpush.msrb.mxu2 %v2884_v2  ;;  %1367 = vmatpush.msra.mxu3 %v2903_v13  ;;  %v4200_v2 = vld [vmem:[#allocation15_spill] sm:$0xff] }
  0xf5   :  { %1238 = vmatpush.msra.mxu0 %v4190_v56  ;;  %1258 = vmatpush.msrb.mxu1 %v4196_v11  ;;  %v4202_v13 = vld [vmem:[#allocation19_spill] sm:$0xff] }
  0xf6   :  { %1239 = vmatmul.f32.vlgmr.msra.gmra.mxu0 %v906_v29  ;;  %1259 = vmatmul.f32.vlgmr.msrb.gmra.mxu1 %v907_v25  ;;  %v3420_v29 = vld [vmem:[#allocation5 + $0x48] sm:$0xff] }
  0xf7   :  { %1304 = vmatpush.msrb.mxu0 %v4197_v34  ;;  %1324 = vmatpush.msra.mxu1 %v2889_v6  ;;  %v4205_v6 = vld [vmem:[#allocation24_spill] sm:$0xff]  ;;  %v3423_v25 = vld [vmem:[#allocation5 + $0xc8] sm:$0xff] }
  0xf8   :  { %1348 = vmatpush.msrb.mxu2 %v4198_v10  ;;  %1368 = vmatpush.msra.mxu3 %v4199_v9  ;;  %v3431_v10 = vld [vmem:[#allocation7 + $0xe0] sm:$0xff] }
  0xf9   :  { %1305 = vmatpush.msrb.mxu0 %v2925_v21  ;;  %1325 = vmatpush.msra.mxu1 %v4200_v2  ;;  %v631_v21 = vpop.f32.mrf.mxu1  ;;  %v3434_v9 = vld [vmem:[#allocation5 + $0x40] sm:$0xff] }
  0xfa   :  { %1349 = vmatpush.msrb.mxu2 %v4201_v24  ;;  %1369 = vmatpush.msra.mxu3 %v4202_v13  ;;  %vm729_vm3 = vcmp.ge.f32.partialorder %v631_v21, 0.0  ;;  %v3437_v2 = vld [vmem:[#allocation5 + $0xc0] sm:$0xff]  ;;  %v3440_v24 = vld [vmem:[#allocation7 + $0x58] sm:$0xff] }
  0xfb   :  { %1306 = vmatpush.msrb.mxu0 %v4203_v51  ;;  %1326 = vmatpush.msra.mxu1 %v2906_v15  ;;  %v4207_v15 = vld [vmem:[#allocation26_spill] sm:$0xff]  ;;  %v3443_v13 = vld [vmem:[#allocation7 + $0xd8] sm:$0xff] }
  0xfc   :  { %1350 = vmatpush.msrb.mxu2 %v2910_v16  ;;  %1370 = vmatpush.msra.mxu3 %v4204_v27  ;;  %v760_v16 = vmul.f32 0.01, %v617_v61  ;;  %v3446_v51 = vld [vmem:[#allocation5 + $0x38] sm:$0xff] }
  0xfd   :  { %1307 = vmatpush.msrb.mxu0 %v4205_v6  ;;  %1327 = vmatpush.msra.mxu1 %v2921_v19  ;;  %v3313_v19 = vld [vmem:[%s4035_s2 + $0x8] sm:$0xff]  ;;  %v3449_v27 = vld [vmem:[#allocation5 + $0xb8] sm:$0xff]  ;;  %v3452_v6 = vld [vmem:[#allocation7 + $0x50] sm:$0xff] }
  0xfe   :  { %1351 = vmatpush.msrb.mxu2 %v2923_v20  ;;  %1371 = vmatpush.msra.mxu3 %v2950_v30  ;;  %v4208_v20 = vld [vmem:[#allocation23_spill] sm:$0xff]  ;;  %v761_v30 = vmul.f32 0.01, %v631_v21 }
  0xff   :  { %1308 = vmatpush.msrb.mxu0 %v2960_v33  ;;  %1328 = vmatpush.msra.mxu1 %v2932_v23  ;;  %v4209_v23 = vld [vmem:[#allocation25_spill] sm:$0xff]  ;;  %v828_v33 = vperm.slane %v3313_v19, 0 }
 0x100   :  { %1352 = vmatpush.msrb.mxu2 %v4206_v26  ;;  %1372 = vmatpush.msra.mxu3 %v4207_v15  ;;  %v3459_v26 = vld [vmem:[#allocation5 + $0x30] sm:$0xff] }
 0x101   :  { %1309 = vmatpush.msrb.mxu0 %v2972_v38  ;;  %1329 = vmatpush.msra.mxu1 %v4208_v20  ;;  %v792_v38 = vsel %vm728_vm2, %v617_v61, %v760_v16  ;;  %v3466_v20 = vld [vmem:[#allocation5 + $0xb0] sm:$0xff] }
 0x102   :  { %1353 = vmatpush.msrb.mxu2 %v2946_v28  ;;  %1373 = vmatpush.msra.mxu3 %v2974_v39  ;;  %v829_v28 = vperm.slane %v3313_v19, 1  ;;  %v793_v39 = vsel %vm729_vm3, %v631_v21, %v761_v30  ;;  %v3456_v21 = vld [vmem:[#allocation7 + $0xd0] sm:$0xff]  ;;  %v3469_v30 = vld [vmem:[#allocation7 + $0x48] sm:$0xff] }
 0x103   :  { %1310 = vmatpush.msrb.mxu0 %v2984_v42  ;;  %1330 = vmatpush.msra.mxu1 %v2956_v31  ;;  %v619_v31 = vpop.f32.mrf.mxu0  ;;  %v860_v42 = vadd.f32 %v828_v33, %v792_v38  ;;  %4213 = vst [vmem:[#allocation28_spill] sm:$0xff] %v3469_v30  ;;  %v3478_v38 = vld [vmem:[#allocation5 + $0x28] sm:$0xff] }
 0x104   :  { %1354 = vmatpush.msrb.mxu2 %v4209_v23  ;;  %1374 = vmatpush.msra.mxu3 %v2986_v43  ;;  %v633_v43 = vpop.f32.mrf.mxu1  ;;  %vm744_vm4 = vcmp.ge.f32.partialorder %v619_v31, 0.0 }
 0x105   :  { %1311 = vmatpush.msrb.mxu0 %v2994_v45  ;;  %1331 = vmatpush.msra.mxu1 %v2968_v35  ;;  %v861_v45 = vadd.f32 %v829_v28, %v793_v39  ;;  %v776_v35 = vmul.f32 0.01, %v619_v31  ;;  %vm745_vm5 = vcmp.ge.f32.partialorder %v633_v43, 0.0  ;;  %v3482_v39 = vld [vmem:[#allocation5 + $0xa8] sm:$0xff] }
 0x106   :  { %1355 = vmatpush.msrb.mxu2 %v2970_v37  ;;  %1375 = vmatpush.msra.mxu3 %v2996_v46  ;;  %v3337_v37 = vpop.f32.mrf.mxu2  ;;  %v3343_v46 = vpop.f32.mrf.mxu3  ;;  %4215 = vst [vmem:[#allocation32_spill] sm:$0xff] %v3482_v39 }
 0x107   :  { %1312 = vmatpush.msrb.mxu0 %v3004_v49  ;;  %1332 = vmatpush.msra.mxu1 %v2980_v40  ;;  %v777_v40 = vmul.f32 0.01, %v633_v43  ;;  %v808_v49 = vsel %vm744_vm4, %v619_v31, %v776_v35  ;;  %v762_v61 = vmul.f32 0.01, %v3337_v37  ;;  %vm730_vm6 = vcmp.ge.f32.partialorder %v3337_v37, 0.0  ;;  %v3485_v31 = vld [vmem:[#allocation7 + $0x40] sm:$0xff] }
 0x108   :  { %1356 = vmatpush.msrb.mxu2 %v2982_v41  ;;  %1376 = vmatpush.msra.mxu3 %v3006_v50  ;;  %v892_v41 = vmax.f32 %v860_v42, 0.0  ;;  %v763_v15 = vmul.f32 0.01, %v3343_v46  ;;  %vm731_vm7 = vcmp.ge.f32.partialorder %v3343_v46, 0.0  ;;  %v3494_v35 = vld [vmem:[#allocation7 + $0xc0] sm:$0xff] }
 0x109   :  { %1313 = vmatpush.msrb.mxu0 %v3017_v53  ;;  %1333 = vmatpush.msra.mxu1 %v2992_v44  ;;  %v893_v44 = vmax.f32 %v861_v45, 0.0  ;;  %v809_v50 = vsel %vm745_vm5, %v633_v43, %v777_v40  ;;  %v3348_v53 = vld [vmem:[#allocation5 + $0x78] sm:$0xff]  ;;  %v794_v42 = vsel %vm730_vm6, %v3337_v37, %v762_v61  ;;  %v4106_v43 = vperm.slane %v3313_v19, 3  ;;  %4217 = vst [vmem:[#allocation33_spill] sm:$0xff] %v3494_v35  ;;  %v3497_v40 = vld [vmem:[#allocation5 + $0x20] sm:$0xff]  ;;  %v3527_v61 = vld [vmem:[#allocation7 + $0xb0] sm:$0xff] }
 0x10a   :  { %1357 = vmatpush.msrb.mxu2 %v4174_v55  ;;  %1377 = vmatpush.msra.mxu3 %v4175_v0  ;;  %v3351_v55 = vld [vmem:[#allocation5 + $0xf8] sm:$0xff]  ;;  %v876_v0 = vadd.f32 %v828_v33, %v808_v49  ;;  %v3475_v33 = vld [vmem:[#allocation7 + $0xc8] sm:$0xff]  ;;  %4218 = vst [vmem:[#allocation34_spill] sm:$0xff] %v3497_v40 }
 0x10b   :  { %1314 = vmatpush.msrb.mxu0 %v4176_v3  ;;  %1334 = vmatpush.msra.mxu1 %v4177_v5  ;;  %v3356_v3 = vld [vmem:[#allocation5 + $0x70] sm:$0xff]  ;;  %v877_v5 = vadd.f32 %v829_v28, %v809_v50  ;;  %v3393_v32 = vpop.f32.mrf.mxu0  ;;  %v4103_v28 = vperm.slane %v3313_v19, 2  ;;  %v3506_v37 = vld [vmem:[#allocation7 + $0x38] sm:$0xff]  ;;  %4225 = vst [vmem:[#allocation42_spill] sm:$0xff] %v3527_v61 }
 0x10c   :  { %1358 = vmatpush.msrb.mxu2 %v4178_v7  ;;  %1378 = vmatpush.msra.mxu3 %v4179_v8  ;;  %v3359_v7 = vld [vmem:[#allocation5 + $0xf0] sm:$0xff]  ;;  %v3364_v8 = vld [vmem:[#allocation5 + $0x68] sm:$0xff]  ;;  %v3401_v54 = vpop.f32.mrf.mxu1  ;;  %v3511_v50 = vld [vmem:[#allocation7 + $0xb8] sm:$0xff]  ;;  %vm732_vm10 = vcmp.ge.f32.partialorder %v3393_v32, 0.0 }
 0x10d   :  { %1315 = vmatpush.msrb.mxu0 %v4180_v14  ;;  %1335 = vmatpush.msra.mxu1 %v4181_v63  ;;  %v3367_v14 = vld [vmem:[#allocation5 + $0xe8] sm:$0xff]  ;;  %v908_v63 = vmax.f32 %v876_v0, 0.0  ;;  %4221 = vst [vmem:[#allocation38_spill] sm:$0xff] %v3511_v50  ;;  %v3514_v0 = vld [vmem:[#allocation5 + $0x18] sm:$0xff]  ;;  %vm733_vm11 = vcmp.ge.f32.partialorder %v3401_v54, 0.0 }
 0x10e   :  { %1359 = vmatpush.msrb.mxu2 %v4182_v59  ;;  %1379 = vmatpush.msra.mxu3 %v4183_v58  ;;  %v3371_v59 = vpop.f32.mrf.mxu2  ;;  %v3374_v58 = vld [vmem:[#allocation5 + $0x60] sm:$0xff]  ;;  %4222 = vst [vmem:[#allocation39_spill] sm:$0xff] %v3514_v0 }
 0x10f   :  { %1360 = vmatmul.f32.vlgmr.msrb.gmra.mxu2 %v892_v41  ;;  %1380 = vmatmul.f32.vlgmr.msra.gmra.mxu3 %v893_v44  ;;  %v795_v41 = vsel %vm731_vm7, %v3343_v46, %v763_v15  ;;  %v3503_v44 = vld [vmem:[#allocation5 + $0xa0] sm:$0xff]  ;;  %v862_v46 = vadd.f32 %v4103_v28, %v794_v42  ;;  %v3530_v15 = vld [vmem:[#allocation5 + $0x10] sm:$0xff]  ;;  %v778_v42 = vmul.f32 0.01, %v3371_v59  ;;  %vm746_vm8 = vcmp.ge.f32.partialorder %v3371_v59, 0.0 }
 0x110   :  { %1425 = vmatpush.msra.mxu2 %v3348_v53  ;;  %1445 = vmatpush.msrb.mxu3 %v3351_v55  ;;  %4219 = vst [vmem:[#allocation36_spill] sm:$0xff] %v3503_v44  ;;  %v3534_v28 = vld [vmem:[#allocation5 + $0x90] sm:$0xff] }
 0x111   :  { %1316 = vmatpush.msrb.mxu0 %v4184_v60  ;;  %1336 = vmatpush.msra.mxu1 %v4185_v36  ;;  %v909_v60 = vmax.f32 %v877_v5, 0.0  ;;  %v3377_v36 = vld [vmem:[#allocation5 + $0xe0] sm:$0xff]  ;;  %v3519_v5 = vld [vmem:[#allocation5 + $0x98] sm:$0xff]  ;;  %4226 = vst [vmem:[#allocation43_spill] sm:$0xff] %v3530_v15 }
 0x112   :  { %1426 = vmatpush.msra.mxu2 %v3356_v3  ;;  %1446 = vmatpush.msrb.mxu3 %v3359_v7  ;;  %4223 = vst [vmem:[#allocation40_spill] sm:$0xff] %v3519_v5 }
 0x113   :  { %1317 = vmatpush.msrb.mxu0 %v4186_v57  ;;  %1337 = vmatpush.msra.mxu1 %v4187_v48  ;;  %v3381_v57 = vpop.f32.mrf.mxu3  ;;  %v3384_v48 = vld [vmem:[#allocation7 + $0x78] sm:$0xff]  ;;  %v3464_v16 = vpop.f32.mrf.mxu0  ;;  %4227 = vst [vmem:[#allocation12_spill] sm:$0xff] %v3534_v28 }
 0x114   :  { %1427 = vmatpush.msra.mxu2 %v3364_v8  ;;  %1447 = vmatpush.msrb.mxu3 %v3367_v14  ;;  %4212 = vst [vmem:[#allocation31_spill] sm:$0xff] %v3464_v16  ;;  %v3473_v23 = vpop.f32.mrf.mxu1  ;;  %vm747_vm9 = vcmp.ge.f32.partialorder %v3381_v57, 0.0 }
 0x115   :  { %1318 = vmatpush.msrb.mxu0 %v4188_v52  ;;  %1338 = vmatpush.msra.mxu1 %v4189_v1  ;;  %v3387_v1 = vld [vmem:[#allocation7 + $0xf8] sm:$0xff]  ;;  %4214 = vst [vmem:[#allocation29_spill] sm:$0xff] %v3473_v23  ;;  %v894_v23 = vmax.f32 %v862_v46, 0.0 }
 0x116   :  { %1428 = vmatpush.msra.mxu2 %v3374_v58  ;;  %1448 = vmatpush.msrb.mxu3 %v3377_v36  ;;  %v3390_v52 = vld [vmem:[#allocation5 + $0x58] sm:$0xff]  ;;  %v3415_v12 = vpop.f32.mrf.mxu2 }
 0x117   :  { %1319 = vmatpush.msrb.mxu0 %v4190_v56  ;;  %1339 = vmatpush.msra.mxu1 %v4196_v11  ;;  %v3395_v56 = vld [vmem:[#allocation5 + $0xd8] sm:$0xff]  ;;  %4210 = vst [vmem:[#allocation27_spill] sm:$0xff] %v3415_v12  ;;  %v3426_v11 = vld [vmem:[#allocation7 + $0x60] sm:$0xff] }
 0x118   :  { %1320 = vmatmul.f32.vlgmr.msrb.gmra.mxu0 %v908_v63  ;;  %1340 = vmatmul.f32.vlgmr.msra.gmra.mxu1 %v909_v60  ;;  %v3522_v63 = vld [vmem:[#allocation7 + $0x30] sm:$0xff]  ;;  %v863_v60 = vadd.f32 %v4106_v43, %v795_v41  ;;  %v779_v41 = vmul.f32 0.01, %v3381_v57  ;;  %v3542_v43 = vld [vmem:[#allocation7 + $0xa8] sm:$0xff] }
 0x119   :  { %1385 = vmatpush.msra.mxu0 %v3384_v48  ;;  %1405 = vmatpush.msrb.mxu1 %v3387_v1  ;;  %4224 = vst [vmem:[#allocation41_spill] sm:$0xff] %v3522_v63 }
 0x11a   :  { %1429 = vmatpush.msra.mxu2 %v3390_v52  ;;  %1449 = vmatpush.msrb.mxu3 %v3395_v56  ;;  %4229 = vst [vmem:[#allocation13_spill] sm:$0xff] %v3542_v43 }
 0x11b   :  { %1386 = vmatpush.msra.mxu0 %v3398_v4  ;;  %1406 = vmatpush.msrb.mxu1 %v3403_v22  ;;  %v3429_v34 = vpop.f32.mrf.mxu3 }
 0x11c   :  { %1430 = vmatpush.msra.mxu2 %v3406_v18  ;;  %1450 = vmatpush.msrb.mxu3 %v3409_v62  ;;  %4211 = vst [vmem:[#allocation30_spill] sm:$0xff] %v3429_v34  ;;  %v3545_v34 = vld [vmem:[#allocation5 + $0x8] sm:$0xff] }
 0x11d   :  { %1387 = vmatpush.msra.mxu0 %v3412_v17  ;;  %1407 = vmatpush.msrb.mxu1 %v3417_v47  ;;  %4230 = vst [vmem:[#allocation11_spill] sm:$0xff] %v3545_v34 }
 0x11e   :  { %1431 = vmatpush.msra.mxu2 %v3420_v29  ;;  %1451 = vmatpush.msrb.mxu3 %v3423_v25  ;;  %v3492_v45 = vpop.f32.mrf.mxu2 }
 0x11f   :  { %1388 = vmatpush.msra.mxu0 %v3426_v11  ;;  %1408 = vmatpush.msrb.mxu1 %v3431_v10  ;;  %4216 = vst [vmem:[#allocation35_spill] sm:$0xff] %v3492_v45 }
 0x120   :  { %1432 = vmatpush.msra.mxu2 %v3434_v9  ;;  %1452 = vmatpush.msrb.mxu3 %v3437_v2 }
 0x121   :  { %1389 = vmatpush.msra.mxu0 %v3440_v24  ;;  %1409 = vmatpush.msrb.mxu1 %v3443_v13 }
 0x122   :  { %1433 = vmatpush.msra.mxu2 %v3446_v51  ;;  %1453 = vmatpush.msrb.mxu3 %v3449_v27 }
 0x123   :  { %1390 = vmatpush.msra.mxu0 %v3452_v6  ;;  %1410 = vmatpush.msrb.mxu1 %v3456_v21  ;;  %v3509_v49 = vpop.f32.mrf.mxu3 }
 0x124   :  { %1434 = vmatpush.msra.mxu2 %v3459_v26  ;;  %1454 = vmatpush.msrb.mxu3 %v3466_v20  ;;  %4220 = vst [vmem:[#allocation37_spill] sm:$0xff] %v3509_v49  ;;  %v3537_v49 = vld [vmem:[#allocation7 + $0x28] sm:$0xff] }
 0x125   :  { %1391 = vmatpush.msra.mxu0 %v3469_v30  ;;  %1411 = vmatpush.msrb.mxu1 %v3475_v33  ;;  %4228 = vst [vmem:[#allocation10_spill] sm:$0xff] %v3537_v49 }
 0x126   :  { %1435 = vmatpush.msra.mxu2 %v3478_v38  ;;  %1455 = vmatpush.msrb.mxu3 %v3482_v39 }
 0x127   :  { %1392 = vmatpush.msra.mxu0 %v3485_v31  ;;  %1412 = vmatpush.msrb.mxu1 %v3494_v35 }
 0x128   :  { %1436 = vmatpush.msra.mxu2 %v3497_v40  ;;  %1456 = vmatpush.msrb.mxu3 %v3503_v44 }
 0x129   :  { %1393 = vmatpush.msra.mxu0 %v3506_v37  ;;  %1413 = vmatpush.msrb.mxu1 %v3511_v50 }
 0x12a   :  { %1437 = vmatpush.msra.mxu2 %v3514_v0  ;;  %1457 = vmatpush.msrb.mxu3 %v3519_v5 }
 0x12b   :  { %1394 = vmatpush.msra.mxu0 %v3522_v63  ;;  %1414 = vmatpush.msrb.mxu1 %v3527_v61  ;;  %v3555_v61 = vld [vmem:[#allocation7 + $0xa0] sm:$0xff]  ;;  %v1037_v46 = vpop.f32.mrf.mxu2 }
 0x12c   :  { %1438 = vmatpush.msra.mxu2 %v3530_v15  ;;  %1458 = vmatpush.msrb.mxu3 %v3534_v28  ;;  %v3549_v28 = vld [vmem:[#allocation5 + $0x88] sm:$0xff]  ;;  %v895_v15 = vmax.f32 %v863_v60, 0.0  ;;  %v1057_v60 = vpop.f32.mrf.mxu3 }
 0x12d   :  { %1395 = vmatpush.msra.mxu0 %v3537_v49  ;;  %v997_v45 = vpop.f32.mrf.mxu0  ;;  %1415 = vmatpush.msrb.mxu1 %v3542_v43  ;;  %v1017_v12 = vpop.f32.mrf.mxu1  ;;  %4231 = vst [vmem:[#allocation44_spill] sm:$0xff] %v3549_v28  ;;  %v3552_v49 = vld [vmem:[#allocation7 + $0x20] sm:$0xff] }
 0x12e   :  { %1439 = vmatpush.msra.mxu2 %v3545_v34  ;;  %1459 = vmatpush.msrb.mxu3 %v3549_v28  ;;  %v1018_v16 = vadd.f32 %v1017_v12, %v997_v45  ;;  %v3558_v43 = vld [vmem:[#allocation5] sm:$0xff]  ;;  %v810_v34 = vsel %vm746_vm8, %v3371_v59, %v778_v42  ;;  %v811_v45 = vsel %vm747_vm9, %v3381_v57, %v779_v41  ;;  %v4234_v42 = vperm.slane %v3313_v19, 2  ;;  %v3586_v41 = vld [vmem:[#allocation7 + $0x10] sm:$0xff] }
 0x12f   :  { %1396 = vmatpush.msra.mxu0 %v3552_v49  ;;  %1416 = vmatpush.msrb.mxu1 %v3555_v61  ;;  %4232 = vst [vmem:[#allocation17_spill] sm:$0xff] %v3558_v43  ;;  %v3564_v28 = vld [vmem:[#allocation5 + $0x80] sm:$0xff]  ;;  %v4235_v57 = vperm.slane %v3313_v19, 3  ;;  %vm1731_vm8 = vcmask 195584  }
 0x130   :  { %1440 = vmatpush.msra.mxu2 %v3558_v43  ;;  %1460 = vmatpush.msrb.mxu3 %v3564_v28  ;;  %v1038_v12 = vadd.f32 %v1037_v46, %v1018_v16  ;;  %v3572_v43 = vld [vmem:[#allocation7 + $0x18] sm:$0xff]  ;;  %v3589_v46 = vld [vmem:[#allocation7 + $0x90] sm:$0xff] }
 0x131   :  { %1441 = vmatmul.f32.vlgmr.msra.gmra.mxu2 %v894_v23  ;;  %1461 = vmatmul.f32.vlgmr.msrb.gmra.mxu3 %v895_v15  ;;  %v878_v23 = vadd.f32 %v4234_v42, %v810_v34  ;;  %v3579_v16 = vld [vmem:[#allocation7 + $0x98] sm:$0xff]  ;;  %v879_v15 = vadd.f32 %v4235_v57, %v811_v45  ;;  %v3594_v34 = vld [vmem:[#allocation7 + $0x8] sm:$0xff]  ;;  %v3602_v42 = vld [vmem:[#allocation7] sm:$0xff] }
 0x132   :  { %1506 = vmatpush.msrb.mxu2 %v3348_v53  ;;  %1526 = vmatpush.msra.mxu3 %v3351_v55  ;;  %v3575_v59 = vadd.f32 %v1057_v60, %v1038_v12  ;;  %v3597_v45 = vld [vmem:[#allocation7 + $0x88] sm:$0xff]  ;;  %v3605_v57 = vld [vmem:[#allocation7 + $0x80] sm:$0xff] }
 0x133   :  { %1397 = vmatpush.msra.mxu0 %v3572_v43  ;;  %1417 = vmatpush.msrb.mxu1 %v3579_v16  ;;  %v910_v12 = vmax.f32 %v878_v23, 0.0  ;;  %v911_v60 = vmax.f32 %v879_v15, 0.0  ;;  %v764_v23 = vmul.f32 0.01, %v3393_v32  ;;  %v765_v15 = vmul.f32 0.01, %v3401_v54 }
 0x134   :  { %4233 = vst [vmem:[#allocation14_spill] sm:$0xff] %v3575_v59  ;;  %1507 = vmatpush.msrb.mxu2 %v3356_v3  ;;  %1527 = vmatpush.msra.mxu3 %v3359_v7  ;;  %v833_v59 = vperm.slane %v3313_v19, 5 }
 0x135   :  { %1398 = vmatpush.msra.mxu0 %v3586_v41  ;;  %1418 = vmatpush.msrb.mxu1 %v3589_v46 }
 0x136   :  { %1508 = vmatpush.msrb.mxu2 %v3364_v8  ;;  %1528 = vmatpush.msra.mxu3 %v3367_v14 }
 0x137   :  { %1399 = vmatpush.msra.mxu0 %v3594_v34  ;;  %1419 = vmatpush.msrb.mxu1 %v3597_v45 }
 0x138   :  { %1509 = vmatpush.msrb.mxu2 %v3374_v58  ;;  %1529 = vmatpush.msra.mxu3 %v3377_v36 }
 0x139   :  { %1400 = vmatpush.msra.mxu0 %v3602_v42  ;;  %1420 = vmatpush.msrb.mxu1 %v3605_v57 }
 0x13a   :  { %1401 = vmatmul.f32.vlgmr.msra.gmra.mxu0 %v910_v12  ;;  %1421 = vmatmul.f32.vlgmr.msrb.gmra.mxu1 %v911_v60  ;;  %v832_v12 = vperm.slane %v3313_v19, 4  ;;  %v796_v60 = vsel %vm732_vm10, %v3393_v32, %v764_v23  ;;  %v4236_v23 = vld [vmem:[#allocation42_spill] sm:$0xff] }
 0x13b   :  { %1466 = vmatpush.msrb.mxu0 %v3384_v48  ;;  %1486 = vmatpush.msra.mxu1 %v3387_v1 }
 0x13c   :  { %1510 = vmatpush.msrb.mxu2 %v3390_v52  ;;  %1530 = vmatpush.msra.mxu3 %v3395_v56 }
 0x13d   :  { %1467 = vmatpush.msrb.mxu0 %v3398_v4  ;;  %1487 = vmatpush.msra.mxu1 %v3403_v22 }
 0x13e   :  { %1511 = vmatpush.msrb.mxu2 %v3406_v18  ;;  %1531 = vmatpush.msra.mxu3 %v3409_v62 }
 0x13f   :  { %1468 = vmatpush.msrb.mxu0 %v3412_v17  ;;  %1488 = vmatpush.msra.mxu1 %v3417_v47 }
 0x140   :  { %1512 = vmatpush.msrb.mxu2 %v3420_v29  ;;  %1532 = vmatpush.msra.mxu3 %v3423_v25 }
 0x141   :  { %1469 = vmatpush.msrb.mxu0 %v3426_v11  ;;  %1489 = vmatpush.msra.mxu1 %v3431_v10 }
 0x142   :  { %1513 = vmatpush.msrb.mxu2 %v3434_v9  ;;  %1533 = vmatpush.msra.mxu3 %v3437_v2 }
 0x143   :  { %1470 = vmatpush.msrb.mxu0 %v3440_v24  ;;  %1490 = vmatpush.msra.mxu1 %v3443_v13 }
 0x144   :  { %1514 = vmatpush.msrb.mxu2 %v3446_v51  ;;  %1534 = vmatpush.msra.mxu3 %v3449_v27 }
 0x145   :  { %1471 = vmatpush.msrb.mxu0 %v3452_v6  ;;  %1491 = vmatpush.msra.mxu1 %v3456_v21 }
 0x146   :  { %1515 = vmatpush.msrb.mxu2 %v3459_v26  ;;  %1535 = vmatpush.msra.mxu3 %v3466_v20 }
 0x147   :  { %1472 = vmatpush.msrb.mxu0 %v3469_v30  ;;  %1492 = vmatpush.msra.mxu1 %v3475_v33  ;;  %v797_v30 = vsel %vm733_vm11, %v3401_v54, %v765_v15  ;;  %v4239_v15 = vld [vmem:[#allocation12_spill] sm:$0xff] }
 0x148   :  { %1516 = vmatpush.msrb.mxu2 %v3478_v38  ;;  %1536 = vmatpush.msra.mxu3 %v3482_v39  ;;  %v864_v39 = vadd.f32 %v832_v12, %v796_v60  ;;  %v865_v32 = vadd.f32 %v833_v59, %v797_v30  ;;  %v4242_v60 = vld [vmem:[#allocation13_spill] sm:$0xff]  ;;  %v4244_v30 = vld [vmem:[#allocation44_spill] sm:$0xff] }
 0x149   :  { %1473 = vmatpush.msrb.mxu0 %v3485_v31  ;;  %1493 = vmatpush.msra.mxu1 %v3494_v35  ;;  %v4237_v35 = vld [vmem:[#allocation43_spill] sm:$0xff] }
 0x14a   :  { %1517 = vmatpush.msrb.mxu2 %v3497_v40  ;;  %1537 = vmatpush.msra.mxu3 %v3503_v44  ;;  %v4238_v40 = vld [vmem:[#allocation31_spill] sm:$0xff]  ;;  %v4240_v44 = vld [vmem:[#allocation10_spill] sm:$0xff] }
 0x14b   :  { %1474 = vmatpush.msrb.mxu0 %v3506_v37  ;;  %1494 = vmatpush.msra.mxu1 %v3511_v50  ;;  %v780_v54 = vmul.f32 0.01, %v4238_v40  ;;  %vm748_vm12 = vcmp.ge.f32.partialorder %v4238_v40, 0.0  ;;  %v4241_v50 = vld [vmem:[#allocation29_spill] sm:$0xff] }
 0x14c   :  { %1518 = vmatpush.msrb.mxu2 %v3514_v0  ;;  %1538 = vmatpush.msra.mxu3 %v3519_v5  ;;  %v781_v0 = vmul.f32 0.01, %v4241_v50  ;;  %v4243_v5 = vld [vmem:[#allocation11_spill] sm:$0xff]  ;;  %vm749_vm13 = vcmp.ge.f32.partialorder %v4241_v50, 0.0 }
 0x14d   :  { %1475 = vmatpush.msrb.mxu0 %v3522_v63  ;;  %1495 = vmatpush.msra.mxu1 %v4236_v23  ;;  %v896_v63 = vmax.f32 %v864_v39, 0.0 }
 0x14e   :  { %1519 = vmatpush.msrb.mxu2 %v4237_v35  ;;  %1539 = vmatpush.msra.mxu3 %v4239_v15  ;;  %v897_v35 = vmax.f32 %v865_v32, 0.0  ;;  %v4245_v15 = vld [vmem:[#allocation17_spill] sm:$0xff] }
 0x14f   :  { %1476 = vmatpush.msrb.mxu0 %v4240_v44  ;;  %1496 = vmatpush.msra.mxu1 %v4242_v60  ;;  %v812_v44 = vsel %vm748_vm12, %v4238_v40, %v780_v54  ;;  %v813_v60 = vsel %vm749_vm13, %v4241_v50, %v781_v0  ;;  %v2752_v40 = vmov 0   ;;  %v3770_v50 = vpop.f32.mrf.mxu1  ;;  %v3772_v0 = vpop.f32.mrf.mxu2  ;;  %v1798_v54 = vld [vmem:[%s4044_s11 + $0x8] sm:$0xff]  ;;  %vm2040_vm12 = vcmask 261120  }
 0x150   :  { %1520 = vmatpush.msrb.mxu2 %v4243_v5  ;;  %1540 = vmatpush.msra.mxu3 %v4244_v30  ;;  %v880_v39 = vadd.f32 %v832_v12, %v812_v44  ;;  %v881_v32 = vadd.f32 %v833_v59, %v813_v60  ;;  %v1684_v44 = vld [vmem:[%s4039_s6 + $0x8] sm:$0xff]  ;;  %v1797_v60 = vld [vmem:[%s4044_s11] sm:$0xff] }
 0x151   :  { %1477 = vmatpush.msrb.mxu0 %v3552_v49  ;;  %1497 = vmatpush.msra.mxu1 %v3555_v61 }
 0x152   :  { %1521 = vmatpush.msrb.mxu2 %v4245_v15  ;;  %1541 = vmatpush.msra.mxu3 %v3564_v28 }
 0x153   :  { %1522 = vmatmul.f32.vlgmr.msrb.gmra.mxu2 %v896_v63  ;;  %1542 = vmatmul.f32.vlgmr.msra.gmra.mxu3 %v897_v35  ;;  %v1778_v63 = vld [vmem:[%s4043_s10 + $0x10] sm:$0xff] }
 0x154   :  { %1587 = vmatpush.msra.mxu2 %v3348_v53  ;;  %1607 = vmatpush.msrb.mxu3 %v3351_v55  ;;  %v912_v53 = vmax.f32 %v880_v39, 0.0  ;;  %v913_v55 = vmax.f32 %v881_v32, 0.0  ;;  %v1705_v39 = vld [vmem:[%s4040_s7 + $0x8] sm:$0xff] }
 0x155   :  { %1478 = vmatpush.msrb.mxu0 %v3572_v43  ;;  %1498 = vmatpush.msra.mxu1 %v3579_v16 }
 0x156   :  { %1588 = vmatpush.msra.mxu2 %v3356_v3  ;;  %1608 = vmatpush.msrb.mxu3 %v3359_v7  ;;  %v4246_v3 = vld [vmem:[#allocation27_spill] sm:$0xff] }
 0x157   :  { %1479 = vmatpush.msrb.mxu0 %v3586_v41  ;;  %1499 = vmatpush.msra.mxu1 %v3589_v46  ;;  %v766_v7 = vmul.f32 0.01, %v4246_v3  ;;  %vm734_vm14 = vcmp.ge.f32.partialorder %v4246_v3, 0.0 }
 0x158   :  { %1589 = vmatpush.msra.mxu2 %v3364_v8  ;;  %1609 = vmatpush.msrb.mxu3 %v3367_v14  ;;  %v4247_v8 = vld [vmem:[#allocation30_spill] sm:$0xff] }
 0x159   :  { %1480 = vmatpush.msrb.mxu0 %v3594_v34  ;;  %1500 = vmatpush.msra.mxu1 %v3597_v45  ;;  %v767_v14 = vmul.f32 0.01, %v4247_v8  ;;  %vm735_vm15 = vcmp.ge.f32.partialorder %v4247_v8, 0.0 }
 0x15a   :  { %1590 = vmatpush.msra.mxu2 %v3374_v58  ;;  %1610 = vmatpush.msrb.mxu3 %v3377_v36  ;;  %v4248_v58 = vld [vmem:[#allocation28_spill] sm:$0xff]  ;;  %v834_v36 = vperm.slane %v3313_v19, 6 }
 0x15b   :  { %1481 = vmatpush.msrb.mxu0 %v3602_v42  ;;  %1501 = vmatpush.msra.mxu1 %v3605_v57 }
 0x15c   :  { %1482 = vmatmul.f32.vlgmr.msrb.gmra.mxu0 %v912_v53  ;;  %1502 = vmatmul.f32.vlgmr.msra.gmra.mxu1 %v913_v55  ;;  %v1975_v55 = vld [vmem:[%s4046_s13 + $0x8] sm:$0xff] }
 0x15d   :  { %1547 = vmatpush.msra.mxu0 %v3384_v48  ;;  %1567 = vmatpush.msrb.mxu1 %v3387_v1  ;;  %v4249_v48 = vld [vmem:[#allocation32_spill] sm:$0xff]  ;;  %v798_v1 = vsel %vm734_vm14, %v4246_v3, %v766_v7 }
 0x15e   :  { %1591 = vmatpush.msra.mxu2 %v3390_v52  ;;  %1611 = vmatpush.msrb.mxu3 %v3395_v56  ;;  %v835_v52 = vperm.slane %v3313_v19, 7  ;;  %v4250_v56 = vld [vmem:[#allocation33_spill] sm:$0xff]  ;;  %v1920_v7 = vld [vmem:[%s4045_s12 + $0x10] sm:$0xff] }
 0x15f   :  { %1548 = vmatpush.msra.mxu0 %v3398_v4  ;;  %1568 = vmatpush.msrb.mxu1 %v3403_v22  ;;  %v4251_v4 = vld [vmem:[#allocation34_spill] sm:$0xff]  ;;  %v799_v22 = vsel %vm735_vm15, %v4247_v8, %v767_v14 }
 0x160   :  { %1592 = vmatpush.msra.mxu2 %v3406_v18  ;;  %1612 = vmatpush.msrb.mxu3 %v3409_v62  ;;  %v4252_v18 = vld [vmem:[#allocation36_spill] sm:$0xff]  ;;  %v4253_v62 = vld [vmem:[#allocation38_spill] sm:$0xff]  ;;  %v867_v19 = vadd.f32 %v835_v52, %v799_v22 }
 0x161   :  { %1549 = vmatpush.msra.mxu0 %v3412_v17  ;;  %1569 = vmatpush.msrb.mxu1 %v3417_v47  ;;  %v4254_v17 = vld [vmem:[#allocation39_spill] sm:$0xff]  ;;  %v866_v47 = vadd.f32 %v834_v36, %v798_v1  ;;  %v1704_v14 = vld [vmem:[%s4040_s7] sm:$0xff] }
 0x162   :  { %1593 = vmatpush.msra.mxu2 %v3420_v29  ;;  %1613 = vmatpush.msrb.mxu3 %v3423_v25  ;;  %v4255_v29 = vld [vmem:[#allocation40_spill] sm:$0xff]  ;;  %v4256_v25 = vld [vmem:[#allocation41_spill] sm:$0xff]  ;;  %v1922_v1 = vld [vmem:[%s4045_s12 + $0x20] sm:$0xff] }
 0x163   :  { %1550 = vmatpush.msra.mxu0 %v3426_v11  ;;  %1570 = vmatpush.msrb.mxu1 %v3431_v10  ;;  %v4257_v11 = vld [vmem:[#allocation35_spill] sm:$0xff] }
 0x164   :  { %1594 = vmatpush.msra.mxu2 %v3434_v9  ;;  %1614 = vmatpush.msrb.mxu3 %v3437_v2  ;;  %v782_v10 = vmul.f32 0.01, %v4257_v11  ;;  %v4258_v9 = vld [vmem:[#allocation43_spill] sm:$0xff]  ;;  %vm750_vm1 = vcmp.ge.f32.partialorder %v4257_v11, 0.0  ;;  %v4259_v2 = vld [vmem:[#allocation37_spill] sm:$0xff] }
 0x165   :  { %1551 = vmatpush.msra.mxu0 %v3440_v24  ;;  %1571 = vmatpush.msrb.mxu1 %v3443_v13  ;;  %v783_v24 = vmul.f32 0.01, %v4259_v2  ;;  %v4260_v13 = vld [vmem:[#allocation12_spill] sm:$0xff]  ;;  %vm751_vm2 = vcmp.ge.f32.partialorder %v4259_v2, 0.0 }
 0x166   :  { %1595 = vmatpush.msra.mxu2 %v3446_v51  ;;  %1615 = vmatpush.msrb.mxu3 %v3449_v27  ;;  %v4261_v51 = vld [vmem:[#allocation10_spill] sm:$0xff]  ;;  %v4262_v27 = vld [vmem:[#allocation13_spill] sm:$0xff] }
 0x167   :  { %1552 = vmatpush.msra.mxu0 %v3452_v6  ;;  %1572 = vmatpush.msrb.mxu1 %v3456_v21  ;;  %v898_v6 = vmax.f32 %v866_v47, 0.0  ;;  %v899_v21 = vmax.f32 %v867_v19, 0.0 }
 0x168   :  { %1596 = vmatpush.msra.mxu2 %v3459_v26  ;;  %1616 = vmatpush.msrb.mxu3 %v3466_v20  ;;  %v814_v26 = vsel %vm750_vm1, %v4257_v11, %v782_v10  ;;  %v815_v20 = vsel %vm751_vm2, %v4259_v2, %v783_v24 }
 0x169   :  { %1553 = vmatpush.msra.mxu0 %v4248_v58  ;;  %1573 = vmatpush.msrb.mxu1 %v3475_v33  ;;  %v882_v33 = vadd.f32 %v834_v36, %v814_v26  ;;  %v1979_v26 = vld [vmem:[%s4046_s13 + $0x28] sm:$0xff] }
 0x16a   :  { %1597 = vmatpush.msra.mxu2 %v3478_v38  ;;  %1617 = vmatpush.msrb.mxu3 %v4249_v48  ;;  %v883_v38 = vadd.f32 %v835_v52, %v815_v20  ;;  %v1921_v48 = vld [vmem:[%s4045_s12 + $0x18] sm:$0xff]  ;;  %v1924_v20 = vld [vmem:[%s4045_s12 + $0x30] sm:$0xff] }
 0x16b   :  { %1554 = vmatpush.msra.mxu0 %v3485_v31  ;;  %1574 = vmatpush.msrb.mxu1 %v4250_v56  ;;  %v914_v31 = vmax.f32 %v882_v33, 0.0  ;;  %v1974_v56 = vld [vmem:[%s4046_s13] sm:$0xff] }
 0x16c   :  { %1598 = vmatpush.msra.mxu2 %v4251_v4  ;;  %1618 = vmatpush.msrb.mxu3 %v4252_v18  ;;  %v915_v35 = vmax.f32 %v883_v38, 0.0 }
 0x16d   :  { %1555 = vmatpush.msra.mxu0 %v3506_v37  ;;  %1575 = vmatpush.msrb.mxu1 %v4253_v62  ;;  %v1683_v37 = vld [vmem:[%s4039_s6] sm:$0xff] }
 0x16e   :  { %1599 = vmatpush.msra.mxu2 %v4254_v17  ;;  %1619 = vmatpush.msrb.mxu3 %v4255_v29  ;;  %v1978_v62 = vld [vmem:[%s4046_s13 + $0x20] sm:$0xff]  ;;  %v1923_v17 = vld [vmem:[%s4045_s12 + $0x28] sm:$0xff] }
 0x16f   :  { %1556 = vmatpush.msra.mxu0 %v4256_v25  ;;  %1576 = vmatpush.msrb.mxu1 %v4236_v23  ;;  %v1776_v25 = vld [vmem:[%s4043_s10] sm:$0xff] }
 0x170   :  { %1600 = vmatpush.msra.mxu2 %v4258_v9  ;;  %1620 = vmatpush.msrb.mxu3 %v4260_v13 }
 0x171   :  { %1557 = vmatpush.msra.mxu0 %v4261_v51  ;;  %1577 = vmatpush.msrb.mxu1 %v4262_v27 }
 0x172   :  { %1601 = vmatpush.msra.mxu2 %v4243_v5  ;;  %1621 = vmatpush.msrb.mxu3 %v4244_v30  ;;  %v1918_v5 = vld [vmem:[%s4045_s12] sm:$0xff] }
 0x173   :  { %1558 = vmatpush.msra.mxu0 %v3552_v49  ;;  %1578 = vmatpush.msrb.mxu1 %v3555_v61  ;;  %v3768_v49 = vpop.f32.mrf.mxu0  ;;  %v3780_v61 = vpop.f32.mrf.mxu3 }
 0x174   :  { %1602 = vmatpush.msra.mxu2 %v4245_v15  ;;  %1622 = vmatpush.msrb.mxu3 %v3564_v28  ;;  %v1685_v28 = vld [vmem:[%s4039_s6 + $0x10] sm:$0xff] }
 0x175   :  { %1603 = vmatmul.f32.vlgmr.msra.gmra.mxu2 %v898_v6  ;;  %1623 = vmatmul.f32.vlgmr.msrb.gmra.mxu3 %v899_v21 }
 0x176   :  { %1559 = vmatpush.msra.mxu0 %v3572_v43  ;;  %1579 = vmatpush.msrb.mxu1 %v3579_v16  ;;  %v1706_v43 = vld [vmem:[%s4040_s7 + $0x10] sm:$0xff]  ;;  %v3784_v16 = vpop.f32.mrf.mxu1 }
 0x177   :  { %2602 = vset.pattern.permute.xlu0 %v2752_v40  ;;  %2603 = vset.pattern.permute.xlu1 %v2752_v40 }
 0x178   :  { %1560 = vmatpush.msra.mxu0 %v3586_v41  ;;  %1580 = vmatpush.msrb.mxu1 %v3589_v46  ;;  %v3786_v41 = vpop.f32.mrf.mxu2 }
 0x179   :  { %1698 = vperm.xlu0 %2602, %v1685_v28   ;;  %1719 = vperm.xlu1 %2603, %v1706_v43   ;;  %v1099_v28 = vadd.f32 %v3770_v50, %v3768_v49  ;;  %v1980_v49 = vld [vmem:[%s4046_s13 + $0x30] sm:$0xff]  ;;  %v2038_v50 = vld [vmem:[%s4048_s15] sm:$0xff] }
 0x17a   :  { %1561 = vmatpush.msra.mxu0 %v3594_v34  ;;  %1581 = vmatpush.msrb.mxu1 %v3597_v45  ;;  %v1777_v34 = vld [vmem:[%s4043_s10 + $0x8] sm:$0xff] }
 0x17b   :  { %2604 = vset.pattern.permute.xlu2 %v2752_v40  ;;  %v3782_v59 = vpop.f32.mrf.mxu0  ;;  %v3788_v46 = vpop.f32.mrf.mxu3 }
 0x17c   :  { %1562 = vmatpush.msra.mxu0 %v3602_v42  ;;  %1582 = vmatpush.msrb.mxu1 %v3605_v57  ;;  %v1799_v42 = vld [vmem:[%s4044_s11 + $0x10] sm:$0xff]  ;;  %v1180_v33 = vadd.f32 %v3784_v16, %v3782_v59 }
 0x17d   :  { %1563 = vmatmul.f32.vlgmr.msra.gmra.mxu0 %v914_v31  ;;  %1583 = vmatmul.f32.vlgmr.msrb.gmra.mxu1 %v915_v35  ;;  %v1919_v35 = vld [vmem:[%s4045_s12 + $0x8] sm:$0xff] }
 0x17e   :  { %v1260_v57 = vpop.f32.mrf.mxu1  ;;  %1714 = vperm.xlu2 %2604, %v1705_v39   ;;  %v1827_v39 = vld [vmem:[%s4042_s9 + $0x30] sm:$0xff] }
 0x180   :  { %v1280_v12 = vpop.f32.mrf.mxu2 }
 0x181   :  { %1693 = vperm.xlu0 %2602, %v1684_v44   ;;  %1688 = vperm.xlu1 %2603, %v1683_v37   ;;  %v1200_v44 = vadd.f32 %v3786_v41, %v1180_v33  ;;  %v1636_v41 = vld [vmem:[%s4038_s5] sm:$0xff] }
 0x183   :  { %v1240_v45 = vpop.f32.mrf.mxu0  ;;  %v3796_v23 = vpop.f32.mrf.mxu3  ;;  %v1220_v59 = vadd.f32 %v3788_v46, %v1200_v44  ;;  %v1821_v46 = vld [vmem:[%s4042_s9] sm:$0xff] }
 0x184   :  { %v1261_v27 = vadd.f32 %v1260_v57, %v1240_v45  ;;  %v1637_v45 = vld [vmem:[%s4038_s5 + $0x8] sm:$0xff]  ;;  %v1925_v57 = vld [vmem:[%s4045_s12 + $0x38] sm:$0xff] }
 0x186   :  { %1709 = vperm.xlu2 %2604, %v1704_v14   ;;  %v1281_v43 = vadd.f32 %v1280_v12, %v1261_v27  ;;  %v1638_v12 = vld [vmem:[%s4038_s5 + $0x10] sm:$0xff] }
 0x189   :  { %1928 = vperm.xlu0 %2602, %v1918_v5   ;;  %1791 = vperm.xlu1 %2603, %v1778_v63   ;;  %v1119_v5 = vadd.f32 %v3772_v0, %v1099_v28  ;;  %v1301_v63 = vadd.f32 %v3796_v23, %v1281_v43  ;;  %v1976_v0 = vld [vmem:[%s4046_s13 + $0x10] sm:$0xff] }
 0x18a   :  { %v1823_v23 = vld [vmem:[%s4042_s9 + $0x10] sm:$0xff] }
 0x18b   :  { %v1139_v16 = vadd.f32 %v3780_v61, %v1119_v5  ;;  %v1977_v61 = vld [vmem:[%s4046_s13 + $0x18] sm:$0xff] }
 0x18e   :  { %1984 = vperm.xlu2 %2604, %v1974_v56  }
 0x191   :  { %1786 = vperm.xlu0 %2602, %v1777_v34   ;;  %1812 = vperm.xlu1 %2603, %v1799_v42   ;;  %v4263_v34 = vld [vmem:[#allocation14_spill] sm:$0xff]  ;;  %v1822_v42 = vld [vmem:[%s4042_s9 + $0x8] sm:$0xff] }
 0x192   :  { %v1361_v32 = vpop.f32.mrf.mxu2  ;;  %v1381_v53 = vpop.f32.mrf.mxu3 }
 0x195   :  { %v1321_v15 = vpop.f32.mrf.mxu0  ;;  %v1341_v30 = vpop.f32.mrf.mxu1 }
 0x196   :  { %1781 = vperm.xlu2 %2604, %v1776_v25   ;;  %v1342_v2 = vadd.f32 %v1341_v30, %v1321_v15  ;;  %v1824_v15 = vld [vmem:[%s4042_s9 + $0x18] sm:$0xff]  ;;  %v1826_v30 = vld [vmem:[%s4042_s9 + $0x28] sm:$0xff] }
 0x198   :  { %v1362_v38 = vadd.f32 %v1361_v32, %v1342_v2  ;;  %v1828_v32 = vld [vmem:[%s4042_s9 + $0x38] sm:$0xff] }
 0x199   :  { %1807 = vperm.xlu0 %2602, %v1798_v54   ;;  %1802 = vperm.xlu1 %2603, %v1797_v60   ;;  %v1981_v54 = vld [vmem:[%s4046_s13 + $0x38] sm:$0xff]  ;;  %v1825_v60 = vld [vmem:[%s4042_s9 + $0x20] sm:$0xff] }
 0x19a   :  { %v1382_v37 = vadd.f32 %v1381_v53, %v1362_v38 }
 0x19e   :  { %1933 = vperm.xlu2 %2604, %v1919_v35  }
 0x1a1   :  { %1989 = vperm.xlu0 %2602, %v1975_v55   ;;  %1938 = vperm.xlu1 %2603, %v1920_v7  }
 0x1a6   :  { %1994 = vperm.xlu2 %2604, %v1976_v0  }
 0x1a9   :  { %1943 = vperm.xlu0 %2602, %v1921_v48   ;;  %1948 = vperm.xlu1 %2603, %v1922_v1  }
 0x1ae   :  { %1999 = vperm.xlu2 %2604, %v1977_v61  }
 0x1b1   :  { %2004 = vperm.xlu0 %2602, %v1978_v62   ;;  %1953 = vperm.xlu1 %2603, %v1923_v17  }
 0x1b4   :  { %v1442_v58 = vpop.f32.mrf.mxu2  ;;  %v1462_v36 = vpop.f32.mrf.mxu3 }
 0x1b6   :  { %1963 = vperm.xlu2 %2604, %v1925_v57  }
 0x1b7   :  { %v1402_v3 = vpop.f32.mrf.mxu0  ;;  %v1422_v8 = vpop.f32.mrf.mxu1 }
 0x1b8   :  { %v1423_v11 = vadd.f32 %v1422_v8, %v1402_v3 }
 0x1b9   :  { %2009 = vperm.xlu0 %2602, %v1979_v26   ;;  %1958 = vperm.xlu1 %2603, %v1924_v20  }
 0x1ba   :  { %v1443_v6 = vadd.f32 %v1442_v58, %v1423_v11 }
 0x1bc   :  { %v1463_v40 = vadd.f32 %v1462_v36, %v1443_v6 }
 0x1be   :  { %2019 = vperm.xlu2 %2604, %v1981_v54  }
 0x1c1   :  { %2014 = vperm.xlu0 %2602, %v1980_v49   ;;  %2206 = vperm.xlu1 %2603, %v2038_v50  }
 0x1d6   :  { %v1523_v22 = vpop.f32.mrf.mxu2  ;;  %v1543_v18 = vpop.f32.mrf.mxu3 }
 0x1d8   :  { %v1715_v55 = vpop.permute.xlu2 %1714 }
 0x1d9   :  { %v1483_v52 = vpop.f32.mrf.mxu0  ;;  %v1503_v4 = vpop.f32.mrf.mxu1 }
 0x1da   :  { %v1504_v47 = vadd.f32 %v1503_v4, %v1483_v52 }
 0x1dc   :  { %v1524_v24 = vadd.f32 %v1523_v22, %v1504_v47 }
 0x1de   :  { %v1544_v31 = vadd.f32 %v1543_v18, %v1524_v24 }
 0x1e0   :  { %v1710_v8 = vpop.permute.xlu2 %1709 }
 0x1e8   :  { %v1985_v36 = vpop.permute.xlu2 %1984 }
 0x1eb   :  { %v1699_v53 = vpop.permute.xlu0 %1698  ;;  %v1720_v3 = vpop.permute.xlu1 %1719 }
 0x1f0   :  { %v3920_v56 = vpop.permute.xlu2 %1781 }
 0x1f3   :  { %v1694_v7 = vpop.permute.xlu0 %1693  ;;  %v1689_v14 = vpop.permute.xlu1 %1688 }
 0x1f8   :  { %v1604_v9 = vpop.f32.mrf.mxu2  ;;  %v1624_v51 = vpop.f32.mrf.mxu3 }
 0x1f9   :  { %v1934_v2 = vpop.permute.xlu2 %1933 }
 0x1fa   :  { %v1564_v29 = vpop.f32.mrf.mxu0  ;;  %v1584_v19 = vpop.f32.mrf.mxu1 }
 0x1fb   :  { %v1585_v10 = vadd.f32 %v1584_v19, %v1564_v29  ;;  %v1929_v58 = vpop.permute.xlu0 %1928  ;;  %v3916_v48 = vpop.permute.xlu1 %1791 }
 0x1fd   :  { %v1605_v13 = vadd.f32 %v1604_v9, %v1585_v10 }
 0x1ff   :  { %v1625_v21 = vadd.f32 %v1624_v51, %v1605_v13 }
 0x201   :  { %1656 = vmatpush.msrb.mxu0 %v1625_v21  ;;  %1861 = vmatpush.msrb.mxu2 %v1625_v21  ;;  %v1995_v44 = vpop.permute.xlu2 %1994 }
 0x203   :  { %1657 = vmatpush.msrb.mxu0 %v1544_v31  ;;  %1862 = vmatpush.msrb.mxu2 %v1544_v31  ;;  %v3918_v1 = vpop.permute.xlu0 %1786  ;;  %v3922_v22 = vpop.permute.xlu1 %1812 }
 0x205   :  { %1658 = vmatpush.msrb.mxu0 %v1463_v40  ;;  %1863 = vmatpush.msrb.mxu2 %v1463_v40 }
 0x207   :  { %1659 = vmatpush.msrb.mxu0 %v1382_v37  ;;  %1864 = vmatpush.msrb.mxu2 %v1382_v37 }
 0x209   :  { %1660 = vmatpush.msrb.mxu0 %v1301_v63  ;;  %1865 = vmatpush.msrb.mxu2 %v1301_v63 }
 0x20b   :  { %1661 = vmatpush.msrb.mxu0 %v1220_v59  ;;  %1866 = vmatpush.msrb.mxu2 %v1220_v59  ;;  %v3924_v17 = vpop.permute.xlu0 %1807  ;;  %v3929_v51 = vpop.permute.xlu1 %1802  ;;  %v1728_v59 = vld [vmem:[%s4041_s8] sm:$0xff] }
 0x20d   :  { %1662 = vmatpush.msrb.mxu0 %v1139_v16  ;;  %1867 = vmatpush.msrb.mxu2 %v1139_v16 }
 0x20f   :  { %1663 = vmatpush.msrb.mxu0 %v4263_v34  ;;  %1868 = vmatpush.msrb.mxu2 %v4263_v34 }
 0x210   :  { %2507 = vmatmul.msk.f32.vlgmr.msrb.gmra.mxu0 %vm492_vm0, %v1636_v41  ;;  %2513 = vmatmul.msk.f32.vlgmr.msrb.gmra.mxu2 %vm492_vm0, %v1821_v46 }
 0x213   :  { %v1990_v26 = vpop.permute.xlu0 %1989  ;;  %v1939_v63 = vpop.permute.xlu1 %1938 }
 0x218   :  { %2508 = vmatmul.msk.f32.gmra.mxu0 %vm492_vm0, %v1637_v45  ;;  %2514 = vmatmul.msk.f32.gmra.mxu2 %vm492_vm0, %v1822_v42 }
 0x21b   :  { %v1944_v0 = vpop.permute.xlu0 %1943 }
 0x220   :  { %2509 = vmatmul.msk.f32.gmra.mxu0 %vm492_vm0, %v1638_v12  ;;  %2515 = vmatmul.msk.f32.gmra.mxu2 %vm492_vm0, %v1823_v23  ;;  %v2000_v12 = vpop.permute.xlu2 %1999 }
 0x228   :  { %2516 = vmatmul.msk.f32.gmra.mxu2 %vm492_vm0, %v1824_v15  ;;  %v1729_v15 = vld [vmem:[%s4041_s8 + $0x8] sm:$0xff] }
 0x230   :  { %2517 = vmatmul.msk.f32.gmra.mxu2 %vm492_vm0, %v1825_v60  ;;  %v1949_v60 = vpop.permute.xlu1 %1948 }
 0x238   :  { %2518 = vmatmul.msk.f32.gmra.mxu2 %vm492_vm0, %v1826_v30 }
 0x240   :  { %2519 = vmatmul.msk.f32.gmra.mxu2 %vm492_vm0, %v1827_v39 }
 0x248   :  { %2520 = vmatmul.msk.f32.gmra.mxu2 %vm492_vm0, %v1828_v32 }
 0x28d   :  { %v1665_v52 = vpop.f32.mrf.mxu0 }
 0x28e   :  { %v1677_v11 = vmul.f32 0.01, %v1665_v52  ;;  %vm1674_vm4 = vcmp.ge.f32.partialorder %v1665_v52, 0.0 }
 0x290   :  { %v1680_v27 = vsel %vm1674_vm4, %v1665_v52, %v1677_v11 }
 0x291   :  { %v1701_v33 = vmul.f32 %v1689_v14, %v1680_v27 }
 0x293   :  { %v1870_v4 = vpop.f32.mrf.mxu2  ;;  %v1722_v40 = vadd.f32 %v1710_v8, %v1701_v33  ;;  %v1730_v8 = vld [vmem:[%s4041_s8 + $0x10] sm:$0xff] }
 0x294   :  { %vm1894_vm3 = vcmp.ge.f32.partialorder %v1870_v4, 0.0  ;;  %v1902_v18 = vmul.f32 0.01, %v1870_v4 }
 0x295   :  { %v1668_v62 = vpop.f32.mrf.mxu0  ;;  %v1725_v50 = vmax.f32 %v1722_v40, 0.0 }
 0x296   :  { %v1910_v47 = vsel %vm1894_vm3, %v1870_v4, %v1902_v18  ;;  %v1678_v25 = vmul.f32 0.01, %v1668_v62  ;;  %vm1675_vm0 = vcmp.ge.f32.partialorder %v1668_v62, 0.0 }
 0x297   :  { %v1966_v29 = vmul.f32 %v1929_v58, %v1910_v47 }
 0x298   :  { %v1681_v24 = vsel %vm1675_vm0, %v1668_v62, %v1678_v25 }
 0x299   :  { %v2022_v19 = vadd.f32 %v1985_v36, %v1966_v29  ;;  %v1702_v21 = vmul.f32 %v1694_v7, %v1681_v24  ;;  %v1954_v36 = vpop.permute.xlu1 %1953 }
 0x29b   :  { %v3926_v10 = vmax.f32 %v2022_v19, 0.0  ;;  %v1873_v9 = vpop.f32.mrf.mxu2  ;;  %v1723_v28 = vadd.f32 %v1715_v55, %v1702_v21  ;;  %v3956_v19 = vld [vmem:[%s4047_s14] sm:$0xff] }
 0x29c   :  { %v1903_v49 = vmul.f32 0.01, %v1873_v9  ;;  %vm1895_vm7 = vcmp.ge.f32.partialorder %v1873_v9, 0.0 }
 0x29d   :  { %v1671_v13 = vpop.f32.mrf.mxu0  ;;  %2056 = vmatpush.msra.mxu3 %v3926_v10  ;;  %v1726_v5 = vmax.f32 %v1723_v28, 0.0 }
 0x29e   :  { %vm1676_vm5 = vcmp.ge.f32.partialorder %v1671_v13, 0.0  ;;  %v1679_v6 = vmul.f32 0.01, %v1671_v13  ;;  %v1911_v46 = vsel %vm1895_vm7, %v1873_v9, %v1903_v49 }
 0x29f   :  { %v1967_v42 = vmul.f32 %v1934_v2, %v1911_v46 }
 0x2a0   :  { %v1682_v20 = vsel %vm1676_vm5, %v1671_v13, %v1679_v6 }
 0x2a1   :  { %v1703_v38 = vmul.f32 %v1699_v53, %v1682_v20  ;;  %v2023_v30 = vadd.f32 %v1990_v26, %v1967_v42  ;;  %v2005_v53 = vpop.permute.xlu0 %2004  ;;  %v1959_v13 = vpop.permute.xlu1 %1958 }
 0x2a3   :  { %v1724_v31 = vadd.f32 %v1720_v3, %v1703_v38  ;;  %v1876_v35 = vpop.f32.mrf.mxu2  ;;  %v3944_v7 = vmax.f32 %v2023_v30, 0.0 }
 0x2a4   :  { %v1904_v37 = vmul.f32 0.01, %v1876_v35  ;;  %vm1896_vm6 = vcmp.ge.f32.partialorder %v1876_v35, 0.0 }
 0x2a5   :  { %v1727_v43 = vmax.f32 %v1724_v31, 0.0 }
 0x2a6   :  { %v1912_v16 = vsel %vm1896_vm6, %v1876_v35, %v1904_v37 }
 0x2a7   :  { %1754 = vmatpush.msra.mxu1 %v1727_v43  ;;  %v1968_v61 = vmul.f32 %v1939_v63, %v1912_v16 }
 0x2a9   :  { %1755 = vmatpush.msra.mxu1 %v1726_v5  ;;  %v2024_v23 = vadd.f32 %v1995_v44, %v1968_v61  ;;  %v2010_v18 = vpop.permute.xlu0 %2009 }
 0x2ab   :  { %1756 = vmatpush.msra.mxu1 %v1725_v50  ;;  %v1879_v41 = vpop.f32.mrf.mxu2  ;;  %v3941_v55 = vmax.f32 %v2024_v23, 0.0 }
 0x2ac   :  { %vm1897_vm9 = vcmp.ge.f32.partialorder %v1879_v41, 0.0  ;;  %v1905_v34 = vmul.f32 0.01, %v1879_v41  ;;  %2510 = vmatmul.msk.f32.vlgmr.msra.gmra.mxu1 %vm1731_vm8, %v1728_v59 }
 0x2ae   :  { %v1913_v45 = vsel %vm1897_vm9, %v1879_v41, %v1905_v34 }
 0x2af   :  { %v1969_v57 = vmul.f32 %v1944_v0, %v1913_v45  ;;  %v2207_v0 = vpop.permute.xlu1 %2206 }
 0x2b1   :  { %v2025_v54 = vadd.f32 %v2000_v12, %v1969_v57  ;;  %v2015_v21 = vpop.permute.xlu0 %2014 }
 0x2b3   :  { %v3938_v39 = vmax.f32 %v2025_v54, 0.0  ;;  %v1882_v32 = vpop.f32.mrf.mxu2 }
 0x2b4   :  { %2511 = vmatmul.msk.f32.gmra.mxu1 %vm1731_vm8, %v1729_v15  ;;  %v1906_v3 = vmul.f32 0.01, %v1882_v32  ;;  %vm1898_vm10 = vcmp.ge.f32.partialorder %v1882_v32, 0.0 }
 0x2b5   :  { %2116 = vmatpush.msrb.mxu1 %v3938_v39 }
 0x2b6   :  { %v1914_v14 = vsel %vm1898_vm10, %v1882_v32, %v1906_v3 }
 0x2b7   :  { %2117 = vmatpush.msrb.mxu1 %v3941_v55  ;;  %v1970_v4 = vmul.f32 %v1949_v60, %v1914_v14 }
 0x2b9   :  { %2118 = vmatpush.msrb.mxu1 %v3944_v7  ;;  %v2026_v29 = vadd.f32 %v2005_v53, %v1970_v4 }
 0x2bb   :  { %v1885_v58 = vpop.f32.mrf.mxu2  ;;  %2119 = vmatpush.msrb.mxu1 %v3926_v10  ;;  %v3962_v24 = vmax.f32 %v2026_v29, 0.0 }
 0x2bc   :  { %vm1899_vm11 = vcmp.ge.f32.partialorder %v1885_v58, 0.0  ;;  %v1907_v52 = vmul.f32 0.01, %v1885_v58  ;;  %2512 = vmatmul.msk.f32.gmra.mxu1 %vm1731_vm8, %v1730_v8 }
 0x2be   :  { %v1915_v62 = vsel %vm1899_vm11, %v1885_v58, %v1907_v52 }
 0x2bf   :  { %v1971_v47 = vmul.f32 %v1954_v36, %v1915_v62 }
 0x2c1   :  { %v2027_v25 = vadd.f32 %v2010_v18, %v1971_v47 }
 0x2c3   :  { %v3958_v11 = vmax.f32 %v2027_v25, 0.0  ;;  %v1888_v9 = vpop.f32.mrf.mxu2 }
 0x2c4   :  { %vm1900_vm13 = vcmp.ge.f32.partialorder %v1888_v9, 0.0  ;;  %v1908_v2 = vmul.f32 0.01, %v1888_v9  ;;  %2524 = vmatmul.msk.f32.vlgmr.msrb.gmra.mxu1 %vm2040_vm12, %v3956_v19 }
 0x2c5   :  { %2156 = vmatpush.msra.mxu1 %v3958_v11 }
 0x2c6   :  { %v1916_v27 = vsel %vm1900_vm13, %v1888_v9, %v1908_v2 }
 0x2c7   :  { %v1972_v6 = vmul.f32 %v1959_v13, %v1916_v27  ;;  %2157 = vmatpush.msra.mxu1 %v3962_v24 }
 0x2c9   :  { %v3966_v26 = vadd.f32 %v2015_v21, %v1972_v6  ;;  %2158 = vmatpush.msra.mxu1 %v3938_v39 }
 0x2cb   :  { %v2036_v20 = vmax.f32 %v3966_v26, 0.0  ;;  %2159 = vmatpush.msra.mxu1 %v3941_v55 }
 0x2cc   :  { %2526 = vmatmul.msk.f32.vlgmr.msra.gmra.mxu1 %vm2040_vm12, %v3956_v19 }
 0x2cd   :  { %2176 = vmatpush.msrb.mxu1 %v2036_v20 }
 0x2cf   :  { %2177 = vmatpush.msrb.mxu1 %v3958_v11 }
 0x2d1   :  { %2178 = vmatpush.msrb.mxu1 %v3962_v24 }
 0x2d3   :  { %2179 = vmatpush.msrb.mxu1 %v3938_v39 }
 0x2d4   :  { %2527 = vmatmul.msk.f32.vlgmr.msrb.gmra.mxu1 %vm2040_vm12, %v3956_v19 }
 0x329   :  { %v1758_v33 = vpop.f32.mrf.mxu1 }
 0x32a   :  { %v1770_v35 = vmul.f32 0.01, %v1758_v33  ;;  %vm1767_vm15 = vcmp.ge.f32.partialorder %v1758_v33, 0.0 }
 0x32c   :  { %v1773_v40 = vsel %vm1767_vm15, %v1758_v33, %v1770_v35 }
 0x32d   :  { %v1794_v63 = vmul.f32 %v3920_v56, %v1773_v40 }
 0x32f   :  { %v1815_v46 = vadd.f32 %v3929_v51, %v1794_v63 }
 0x331   :  { %v1761_v38 = vpop.f32.mrf.mxu1 }
 0x332   :  { %v1771_v31 = vmul.f32 0.01, %v1761_v38  ;;  %vm1768_vm14 = vcmp.ge.f32.partialorder %v1761_v38, 0.0 }
 0x334   :  { %v1774_v28 = vsel %vm1768_vm14, %v1761_v38, %v1771_v31 }
 0x335   :  { %v1795_v37 = vmul.f32 %v3918_v1, %v1774_v28  ;;  %v1818_v1 = vmax.f32 %v1815_v46, 0.0 }
 0x337   :  { %v1816_v59 = vadd.f32 %v3924_v17, %v1795_v37  ;;  %v1964_v17 = vpop.permute.xlu2 %1963 }
 0x339   :  { %v1764_v43 = vpop.f32.mrf.mxu1  ;;  %v1819_v61 = vmax.f32 %v1816_v59, 0.0 }
 0x33a   :  { %vm1769_vm1 = vcmp.ge.f32.partialorder %v1764_v43, 0.0  ;;  %v1772_v44 = vmul.f32 0.01, %v1764_v43 }
 0x33c   :  { %v1775_v5 = vsel %vm1769_vm1, %v1764_v43, %v1772_v44 }
 0x33d   :  { %v1796_v49 = vmul.f32 %v3916_v48, %v1775_v5 }
 0x33f   :  { %v1817_v50 = vadd.f32 %v3922_v22, %v1796_v49  ;;  %v1891_v22 = vpop.f32.mrf.mxu2  ;;  %v2020_v23 = vpop.permute.xlu2 %2019 }
 0x340   :  { %v1909_v51 = vmul.f32 0.01, %v1891_v22  ;;  %vm1901_vm2 = vcmp.ge.f32.partialorder %v1891_v22, 0.0 }
 0x341   :  { %v2121_v16 = vpop.f32.mrf.mxu1  ;;  %v1820_v41 = vmax.f32 %v1817_v50, 0.0 }
 0x342   :  { %v2212_v34 = vadd.f32 %v2207_v0, %v2121_v16  ;;  %v1917_v42 = vsel %vm1901_vm2, %v1891_v22, %v1909_v51 }
 0x343   :  { %2057 = vmatpush.msra.mxu3 %v1820_v41  ;;  %v1973_v12 = vmul.f32 %v1964_v17, %v1917_v42 }
 0x344   :  { %2220 = vst [vmem:[%s4049_s16 + $0x18] sm:$0xff] %v2212_v34 }
 0x345   :  { %2058 = vmatpush.msra.mxu3 %v1819_v61  ;;  %v2029_v54 = vadd.f32 %v2020_v23, %v1973_v12 }
 0x347   :  { %2059 = vmatpush.msra.mxu3 %v1818_v1  ;;  %v2037_v15 = vmax.f32 %v2029_v54, 0.0 }
 0x348   :  { %2521 = vmatmul.msk.f32.vlgmr.msra.gmra.mxu3 %vm2040_vm12, %v3956_v19 }
 0x349   :  { %2076 = vmatpush.msrb.mxu3 %v3944_v7  ;;  %v2161_v48 = vpop.f32.mrf.mxu1 }
 0x34a   :  { %v2214_v56 = vadd.f32 %v2207_v0, %v2161_v48 }
 0x34b   :  { %2077 = vmatpush.msrb.mxu3 %v3926_v10 }
 0x34c   :  { %2222 = vst [vmem:[%s4049_s16 + $0x28] sm:$0xff] %v2214_v56 }
 0x34d   :  { %2078 = vmatpush.msrb.mxu3 %v1820_v41 }
 0x34f   :  { %2079 = vmatpush.msrb.mxu3 %v1819_v61 }
 0x350   :  { %2522 = vmatmul.msk.f32.vlgmr.msrb.gmra.mxu3 %vm2040_vm12, %v3956_v19 }
 0x351   :  { %2096 = vmatpush.msra.mxu3 %v3941_v55  ;;  %v2181_v45 = vpop.f32.mrf.mxu1 }
 0x352   :  { %v2215_v57 = vadd.f32 %v2207_v0, %v2181_v45 }
 0x353   :  { %2097 = vmatpush.msra.mxu3 %v3944_v7 }
 0x354   :  { %2223 = vst [vmem:[%s4049_s16 + $0x30] sm:$0xff] %v2215_v57 }
 0x355   :  { %2098 = vmatpush.msra.mxu3 %v3926_v10 }
 0x357   :  { %2099 = vmatpush.msra.mxu3 %v1820_v41 }
 0x358   :  { %2523 = vmatmul.msk.f32.vlgmr.msra.gmra.mxu3 %vm2040_vm12, %v3956_v19 }
 0x359   :  { %2136 = vmatpush.msrb.mxu3 %v3962_v24 }
 0x35b   :  { %2137 = vmatpush.msrb.mxu3 %v3938_v39 }
 0x35d   :  { %2138 = vmatpush.msrb.mxu3 %v3941_v55 }
 0x35f   :  { %2139 = vmatpush.msrb.mxu3 %v3944_v7 }
 0x360   :  { %2525 = vmatmul.msk.f32.vlgmr.msrb.gmra.mxu3 %vm2040_vm12, %v3956_v19 }
 0x361   :  { %2196 = vmatpush.msra.mxu3 %v2037_v15 }
 0x363   :  { %2197 = vmatpush.msra.mxu3 %v2036_v20 }
 0x365   :  { %2198 = vmatpush.msra.mxu3 %v3958_v11 }
 0x367   :  { %2199 = vmatpush.msra.mxu3 %v3962_v24 }
 0x368   :  { %2528 = vmatmul.msk.f32.vlgmr.msra.gmra.mxu3 %vm2040_vm12, %v3956_v19 }
 0x3cb   :  { %v2061_v10 = vpop.f32.mrf.mxu3 }
 0x3cc   :  { %v2209_v60 = vadd.f32 %v2207_v0, %v2061_v10 }
 0x3ce   :  { %2217 = vst [vmem:[%s4049_s16] sm:$0xff] %v2209_v60 }
 0x3d3   :  { %v2081_v30 = vpop.f32.mrf.mxu3 }
 0x3d4   :  { %v2210_v39 = vadd.f32 %v2207_v0, %v2081_v30 }
 0x3d6   :  { %2218 = vst [vmem:[%s4049_s16 + $0x8] sm:$0xff] %v2210_v39 }
 0x3db   :  { %v2101_v32 = vpop.f32.mrf.mxu3 }
 0x3dc   :  { %v2211_v53 = vadd.f32 %v2207_v0, %v2101_v32 }
 0x3de   :  { %2219 = vst [vmem:[%s4049_s16 + $0x10] sm:$0xff] %v2211_v53 }
 0x3e3   :  { %v2141_v55 = vpop.f32.mrf.mxu3 }
 0x3e4   :  { %v2213_v3 = vadd.f32 %v2207_v0, %v2141_v55 }
 0x3e6   :  { %2221 = vst [vmem:[%s4049_s16 + $0x20] sm:$0xff] %v2213_v3 }
 0x3eb   :  { %v2201_v7 = vpop.f32.mrf.mxu3 }
 0x3ec   :  { %v2216_v8 = vadd.f32 %v2207_v0, %v2201_v7 }
 0x3ee   :  { %2224 = vst [vmem:[%s4049_s16 + $0x38] sm:$0xff] %v2216_v8 }
 0x3ef   :  { %2229 = vsyncpa [#allocation4], 1 }
 0x3f0   :  { %2230 = vsyncpa [#allocation6], 1 }

</bundles_post_ra>
